<compile_context>
chip_gen: v6e
topology: v6e:2x2x1
jax: 0.10.0
libtpu: 0.0.40
codegen_flags: <defaults>
</compile_context>

<pallas_src>
import jax
import jax.numpy as jnp
from jax.experimental import pallas as pl
from jax.experimental.pallas import tpu as pltpu

# ---------------- problem sizes (small, consistent with the module) ----------
B = 2          # batch
S = 8          # sequence length
E = 32         # embed_dim
H = 4          # n_heads
HD = E // H    # head_dim
PF = 64        # posff_dim
EPS_MASK = 1e-10   # ScaleDotProductAttention epsilon (fills with -epsilon!)
LN_EPS = 1e-5      # torch.nn.LayerNorm default eps

# float32 keeps exact fp32 module semantics; use jnp.bfloat16 on v6e/v7x for
# full-rate MXU (elementwise / softmax / LayerNorm math stays f32 regardless).
MXU_DTYPE = jnp.float32


def _layernorm(x, gamma, beta):
    # x: (R, D), gamma/beta: (1, D).  PyTorch LayerNorm uses biased variance.
    mean = jnp.mean(x, axis=-1, keepdims=True)
    var = jnp.mean((x - mean) ** 2, axis=-1, keepdims=True)
    return (x - mean) * jax.lax.rsqrt(var + LN_EPS) * gamma + beta


def encoder_layer_kernel(
    x_ref, mask_ref,
    wqkvo_ref, bqkvo_ref, w1_ref, w2_ref, bff_ref, lnp_ref,
    out_ref, attn_ref,
    wacc_ref,
):
    x = x_ref[...]                               # (B*S, E) f32
    mask = mask_ref[...]                         # (B, S) int32
    wqkvo = wqkvo_ref[...].astype(MXU_DTYPE)     # (E, 4E) packed [wq|wk|wv|wo]
    bqkvo = bqkvo_ref[...]                       # (1, 4E) packed [bq|bk|bv|bo]

    # ---- fused Q|K|V|(O) projection: one lane-dense (B*S, 128) matmul ----
    proj = jnp.dot(x.astype(MXU_DTYPE), wqkvo,
                   preferred_element_type=jnp.float32) + bqkvo   # (B*S, 4E)
    q = proj[:, 0 * E:1 * E]
    k = proj[:, 1 * E:2 * E]
    v = proj[:, 2 * E:3 * E]

    inv_scale = 1.0 / jnp.sqrt(jnp.float32(E))   # module scales by sqrt(embed_dim)

    # ---- attention (the only mask-dependent part), static loops over B, H ----
    for b in range(B):
        r0 = b * S
        q_b = q[r0:r0 + S, :]                    # (S, E)
        k_b = k[r0:r0 + S, :]
        v_b = v[r0:r0 + S, :]
        kT_b = k_b.T                             # (E, S): one 2-D transpose/batch
        mask_row = (mask[b:b + 1, :] == 0)       # (1, S), broadcast over queries

        for h in range(H):
            c0 = h * HD
            qh = q_b[:, c0:c0 + HD]              # (S, HD)  lane slice
            kTh = kT_b[c0:c0 + HD, :]            # (HD, S)  sublane slice
            vh = v_b[:, c0:c0 + HD]              # (S, HD)
            energy = jnp.dot(qh.astype(MXU_DTYPE), kTh.astype(MXU_DTYPE),
                             preferred_element_type=jnp.float32) * inv_scale
            # NB: source does masked_fill(mask == 0, -epsilon) -> fills with -1e-10
            energy = jnp.where(mask_row, jnp.float32(-EPS_MASK), energy)
            e_max = jnp.max(energy, axis=-1, keepdims=True)
            e_exp = jnp.exp(energy - e_max)
            attn = e_exp / jnp.sum(e_exp, axis=-1, keepdims=True)   # (S, S)
            # lane-dense attention-score slab: row = (b, q), col = (h, k)
            attn_ref[r0:r0 + S, h * S:(h + 1) * S] = attn
            # head output written straight into the (B*S, E) scratch slab
            wacc_ref[r0:r0 + S, c0:c0 + HD] = jnp.dot(
                attn.astype(MXU_DTYPE), vh.astype(MXU_DTYPE),
                preferred_element_type=jnp.float32)

    weighted = wacc_ref[...]                     # (B*S, E)

    # ---- output projection + residual + LayerNorm 1 (whole batch at once) ----
    wo = wqkvo[:, 3 * E:4 * E]
    bo = bqkvo[:, 3 * E:4 * E]
    mha = jnp.dot(weighted.astype(MXU_DTYPE), wo,
                  preferred_element_type=jnp.float32) + bo
    lnp = lnp_ref[...]                           # (4, E): [g1; be1; g2; be2]
    ln1 = _layernorm(x + mha, lnp[0:1, :], lnp[1:2, :])   # dropout == identity

    # ---- position-wise feed-forward + residual + LayerNorm 2 ----
    bff = bff_ref[...]                           # (1, PF + E): [b1 | b2]
    ff1 = jnp.maximum(
        jnp.dot(ln1.astype(MXU_DTYPE), w1_ref[...].astype(MXU_DTYPE),
                preferred_element_type=jnp.float32) + bff[:, :PF], 0.0)
    ff2 = jnp.dot(ff1.astype(MXU_DTYPE), w2_ref[...].astype(MXU_DTYPE),
                  preferred_element_type=jnp.float32) + bff[:, PF:PF + E]
    out_ref[...] = _layernorm(ln1 + ff2, lnp[2:3, :], lnp[3:4, :])


def _full_spec(shape):
    nd = len(shape)
    return pl.BlockSpec(shape, lambda i, _nd=nd: (0,) * _nd)


@jax.jit
def encoder_layer(x, mask, params):
    wqkvo, bqkvo, w1, w2, bff, lnp = params
    x2d = x.reshape(B * S, E)                    # free layout plumbing in XLA
    inputs = (x2d, mask, wqkvo, bqkvo, w1, w2, bff, lnp)

    out2d, attn2d = pl.pallas_call(
        encoder_layer_kernel,
        out_shape=[jax.ShapeDtypeStruct((B * S, E), jnp.float32),
                   jax.ShapeDtypeStruct((B * S, H * S), jnp.float32)],
        grid_spec=pltpu.PrefetchScalarGridSpec(
            num_scalar_prefetch=0,
            grid=(1,),                            # whole problem in one step
            in_specs=[_full_spec(a.shape) for a in inputs],
            out_specs=[_full_spec((B * S, E)), _full_spec((B * S, H * S))],
            scratch_shapes=[pltpu.VMEM((B * S, E), jnp.float32)],
        ),
        compiler_params=pltpu.CompilerParams(
            dimension_semantics=("arbitrary",)),
    )(*inputs)

    out = out2d.reshape(B, S, E)
    attn = attn2d.reshape(B, S, H, S).transpose(0, 2, 1, 3)   # -> (B, H, S, S)
    return out, attn


# ---------------- pure-JAX reference (for a sanity check) --------------------
def encoder_layer_ref(x, mask, params):
    wqkvo, bqkvo, w1, w2, bff, lnp = params
    wq, wk, wv, wo = (wqkvo[:, i * E:(i + 1) * E] for i in range(4))
    bq, bk, bv, bo = (bqkvo[:, i * E:(i + 1) * E] for i in range(4))
    b1, b2 = bff[:, :PF], bff[:, PF:]
    g1, be1, g2, be2 = lnp[0:1], lnp[1:2], lnp[2:3], lnp[3:4]

    def ln(t, g, b):
        m = jnp.mean(t, axis=-1, keepdims=True)
        v_ = jnp.mean((t - m) ** 2, axis=-1, keepdims=True)
        return (t - m) / jnp.sqrt(v_ + LN_EPS) * g + b

    q = x @ wq + bq
    k = x @ wk + bk
    v = x @ wv + bv
    q = q.reshape(B, S, H, HD).transpose(0, 2, 1, 3)
    k = k.reshape(B, S, H, HD).transpose(0, 2, 1, 3)
    v = v.reshape(B, S, H, HD).transpose(0, 2, 1, 3)
    energy = jnp.einsum('bhqd,bhkd->bhqk', q, k) / jnp.sqrt(jnp.float32(E))
    energy = jnp.where(mask[:, None, None, :] == 0, -EPS_MASK, energy)
    attn = jax.nn.softmax(energy, axis=-1)
    weighted = jnp.einsum('bhqk,bhkd->bhqd', attn, v)
    weighted = weighted.transpose(0, 2, 1, 3).reshape(B, S, E)
    mha = weighted @ wo + bo
    ln1 = ln(x + mha, g1, be1)
    ff = jnp.maximum(ln1 @ w1 + b1, 0.0) @ w2 + b2
    out = ln(ln1 + ff, g2, be2)
    return out, attn


# ---------------- deterministic packed-parameter init -------------------------
def init_params(key):
    ks = jax.random.split(key, 6)

    def lin(k, din, dout):
        # PyTorch Linear stores (out, in); we pre-transpose to (in, out).
        bound = 1.0 / (din ** 0.5)
        w = jax.random.uniform(k, (din, dout), jnp.float32, -bound, bound)
        b = jax.random.uniform(jax.random.fold_in(k, 1), (1, dout),
                               jnp.float32, -bound, bound)
        return w, b

    wq, bq = lin(ks[0], E, E)
    wk, bk = lin(ks[1], E, E)
    wv, bv = lin(ks[2], E, E)
    wo, bo = lin(ks[3], E, E)
    w1, b1 = lin(ks[4], E, PF)
    w2, b2 = lin(ks[5], PF, E)
    g1 = jnp.ones((1, E), jnp.float32)
    be1 = jnp.zeros((1, E), jnp.float32)
    g2 = jnp.ones((1, E), jnp.float32)
    be2 = jnp.zeros((1, E), jnp.float32)

    wqkvo = jnp.concatenate([wq, wk, wv, wo], axis=1)   # (E, 4E) = (32, 128)
    bqkvo = jnp.concatenate([bq, bk, bv, bo], axis=1)   # (1, 4E) = (1, 128)
    bff = jnp.concatenate([b1, b2], axis=1)             # (1, PF + E) = (1, 96)
    lnp = jnp.concatenate([g1, be1, g2, be2], axis=0)   # (4, E)
    return (wqkvo, bqkvo, w1, w2, bff, lnp)


if __name__ == "__main__":
    key = jax.random.PRNGKey(0)
    kx, kp = jax.random.split(key)
    x = jax.random.normal(kx, (B, S, E), dtype=jnp.float32)
    # padding-style mask: last two key positions of batch 1 are padded (0)
    mask = jnp.ones((B, S), dtype=jnp.int32)
    mask = mask.at[1, S - 2:].set(0)
    params = init_params(kp)

    out, attn = encoder_layer(x, mask, params)
    out = jax.block_until_ready(out)
    attn = jax.block_until_ready(attn)

    out_ref, attn_ref = encoder_layer_ref(x, mask, params)
    assert out.shape == (B, S, E) and attn.shape == (B, H, S, S)
    assert jnp.allclose(out, out_ref, atol=1e-4, rtol=1e-4), "output mismatch"
    assert jnp.allclose(attn, attn_ref, atol=1e-5, rtol=1e-4), "attention mismatch"

    print("KERNEL_OK")
</pallas_src>

<mosaic_0001>
module attributes {stable_mosaic.version = 11 : i64} {
  func.func @encoder_layer_kernel(%arg0: i32, %arg1: memref<16x32xf32, #tpu.memory_space<vmem>>, %arg2: memref<2x8xi32, #tpu.memory_space<vmem>>, %arg3: memref<32x128xf32, #tpu.memory_space<vmem>>, %arg4: memref<1x128xf32, #tpu.memory_space<vmem>>, %arg5: memref<32x64xf32, #tpu.memory_space<vmem>>, %arg6: memref<64x32xf32, #tpu.memory_space<vmem>>, %arg7: memref<1x96xf32, #tpu.memory_space<vmem>>, %arg8: memref<4x32xf32, #tpu.memory_space<vmem>>, %arg9: memref<16x32xf32, #tpu.memory_space<vmem>>, %arg10: memref<16x32xf32, #tpu.memory_space<vmem>>, %arg11: memref<16x32xf32, #tpu.memory_space<vmem>>) attributes {dimension_semantics = [#tpu.dimension_semantics<arbitrary>], iteration_bounds = array<i64: 1>, scalar_prefetch = 0 : i64, scratch_operands = 1 : i64, tpu.core_type = #tpu.core_type<tc>, window_params = [{pipeline_mode = #tpu.pipeline_mode<synchronous>, transform_indices = @transform_0, window_bounds = array<i64: 16, 32>}, {pipeline_mode = #tpu.pipeline_mode<synchronous>, transform_indices = @transform_1, window_bounds = array<i64: 2, 8>}, {pipeline_mode = #tpu.pipeline_mode<synchronous>, transform_indices = @transform_2, window_bounds = array<i64: 32, 128>}, {pipeline_mode = #tpu.pipeline_mode<synchronous>, transform_indices = @transform_3, window_bounds = array<i64: 1, 128>}, {pipeline_mode = #tpu.pipeline_mode<synchronous>, transform_indices = @transform_4, window_bounds = array<i64: 32, 64>}, {pipeline_mode = #tpu.pipeline_mode<synchronous>, transform_indices = @transform_5, window_bounds = array<i64: 64, 32>}, {pipeline_mode = #tpu.pipeline_mode<synchronous>, transform_indices = @transform_6, window_bounds = array<i64: 1, 96>}, {pipeline_mode = #tpu.pipeline_mode<synchronous>, transform_indices = @transform_7, window_bounds = array<i64: 4, 32>}, {pipeline_mode = #tpu.pipeline_mode<synchronous>, transform_indices = @transform_8, window_bounds = array<i64: 16, 32>}, {pipeline_mode = #tpu.pipeline_mode<synchronous>, transform_indices = @transform_9, window_bounds = array<i64: 16, 32>}]} {
    %c0 = arith.constant 0 : index
    %c0_0 = arith.constant 0 : index
    %0 = vector.load %arg1[%c0, %c0_0] : memref<16x32xf32, #tpu.memory_space<vmem>>, vector<16x32xf32>
    %c0_1 = arith.constant 0 : index
    %c0_2 = arith.constant 0 : index
    %1 = vector.load %arg2[%c0_1, %c0_2] : memref<2x8xi32, #tpu.memory_space<vmem>>, vector<2x8xi32>
    %c0_3 = arith.constant 0 : index
    %c0_4 = arith.constant 0 : index
    %2 = vector.load %arg3[%c0_3, %c0_4] : memref<32x128xf32, #tpu.memory_space<vmem>>, vector<32x128xf32>
    %c0_5 = arith.constant 0 : index
    %c0_6 = arith.constant 0 : index
    %3 = vector.load %arg4[%c0_5, %c0_6] : memref<1x128xf32, #tpu.memory_space<vmem>>, vector<1x128xf32>
    %cst = arith.constant dense<0.000000e+00> : vector<16x128xf32>
    %4 = tpu.matmul %0, %2, %cst {dimension_numbers = #tpu.dot_dimension_numbers<[1], [0], [0], [1], [0, 0, 1, 1], [], []>} : vector<16x32xf32>, vector<32x128xf32>, vector<16x128xf32> -> vector<16x128xf32>
    %5 = vector.broadcast %3 : vector<1x128xf32> to vector<16x128xf32>
    %6 = arith.addf %4, %5 : vector<16x128xf32>
    %7 = vector.extract_strided_slice %6 {offsets = [0, 0], sizes = [16, 32], strides = [1, 1]} : vector<16x128xf32> to vector<16x32xf32>
    %8 = vector.extract_strided_slice %6 {offsets = [0, 32], sizes = [16, 32], strides = [1, 1]} : vector<16x128xf32> to vector<16x32xf32>
    %9 = vector.extract_strided_slice %6 {offsets = [0, 64], sizes = [16, 32], strides = [1, 1]} : vector<16x128xf32> to vector<16x32xf32>
    %cst_7 = arith.constant 3.200000e+01 : f32
    %10 = math.sqrt %cst_7 : f32
    %cst_8 = arith.constant 1.000000e+00 : f32
    %11 = arith.divf %cst_8, %10 : f32
    %12 = vector.extract_strided_slice %7 {offsets = [0, 0], sizes = [8, 32], strides = [1, 1]} : vector<16x32xf32> to vector<8x32xf32>
    %13 = vector.extract_strided_slice %8 {offsets = [0, 0], sizes = [8, 32], strides = [1, 1]} : vector<16x32xf32> to vector<8x32xf32>
    %14 = vector.extract_strided_slice %9 {offsets = [0, 0], sizes = [8, 32], strides = [1, 1]} : vector<16x32xf32> to vector<8x32xf32>
    %15 = tpu.transpose %13, [1, 0] : vector<8x32xf32> -> vector<32x8xf32>
    %16 = vector.extract_strided_slice %1 {offsets = [0, 0], sizes = [1, 8], strides = [1, 1]} : vector<2x8xi32> to vector<1x8xi32>
    %c0_i32 = arith.constant 0 : i32
    %17 = vector.broadcast %c0_i32 : i32 to vector<1x8xi32>
    %18 = arith.cmpi eq, %16, %17 : vector<1x8xi32>
    %19 = vector.extract_strided_slice %12 {offsets = [0, 0], sizes = [8, 8], strides = [1, 1]} : vector<8x32xf32> to vector<8x8xf32>
    %20 = vector.extract_strided_slice %15 {offsets = [0, 0], sizes = [8, 8], strides = [1, 1]} : vector<32x8xf32> to vector<8x8xf32>
    %21 = vector.extract_strided_slice %14 {offsets = [0, 0], sizes = [8, 8], strides = [1, 1]} : vector<8x32xf32> to vector<8x8xf32>
    %cst_9 = arith.constant dense<0.000000e+00> : vector<8x8xf32>
    %22 = tpu.matmul %19, %20, %cst_9 {dimension_numbers = #tpu.dot_dimension_numbers<[1], [0], [0], [1], [0, 0, 1, 1], [], []>} : vector<8x8xf32>, vector<8x8xf32>, vector<8x8xf32> -> vector<8x8xf32>
    %23 = vector.broadcast %11 : f32 to vector<8x8xf32>
    %24 = arith.mulf %22, %23 : vector<8x8xf32>
    %cst_10 = arith.constant -1.000000e-10 : f32
    %25 = vector.shape_cast %18 : vector<1x8xi1> to vector<1x8xi1>
    %26 = vector.broadcast %25 : vector<1x8xi1> to vector<8x8xi1>
    %27 = vector.broadcast %cst_10 : f32 to vector<8x8xf32>
    %28 = arith.select %26, %27, %24 : vector<8x8xi1>, vector<8x8xf32>
    %cst_11 = arith.constant dense<0xFF800000> : vector<8xf32>
    %29 = vector.multi_reduction <maximumf>, %28, %cst_11 [1] : vector<8x8xf32> to vector<8xf32>
    %30 = vector.shape_cast %29 : vector<8xf32> to vector<8x1xf32>
    %31 = vector.broadcast %30 : vector<8x1xf32> to vector<8x8xf32>
    %32 = arith.subf %28, %31 : vector<8x8xf32>
    %33 = math.exp %32 : vector<8x8xf32>
    %cst_12 = arith.constant dense<0.000000e+00> : vector<8xf32>
    %34 = vector.multi_reduction <add>, %33, %cst_12 [1] : vector<8x8xf32> to vector<8xf32>
    %35 = vector.shape_cast %34 : vector<8xf32> to vector<8x1xf32>
    %36 = vector.broadcast %35 : vector<8x1xf32> to vector<8x8xf32>
    %37 = arith.divf %33, %36 : vector<8x8xf32>
    %c0_13 = arith.constant 0 : index
    %c0_14 = arith.constant 0 : index
    %38 = vector.load %arg10[%c0_13, %c0_14] : memref<16x32xf32, #tpu.memory_space<vmem>>, vector<8x8xf32>
    tpu.vector_store %arg10[%c0_13, %c0_14], %37 {strides = array<i32>} : memref<16x32xf32, #tpu.memory_space<vmem>>, vector<8x8xf32>,
    %cst_15 = arith.constant dense<0.000000e+00> : vector<8x8xf32>
    %39 = tpu.matmul %37, %21, %cst_15 {dimension_numbers = #tpu.dot_dimension_numbers<[1], [0], [0], [1], [0, 0, 1, 1], [], []>} : vector<8x8xf32>, vector<8x8xf32>, vector<8x8xf32> -> vector<8x8xf32>
    %c0_16 = arith.constant 0 : index
    %c0_17 = arith.constant 0 : index
    %40 = vector.load %arg11[%c0_16, %c0_17] : memref<16x32xf32, #tpu.memory_space<vmem>>, vector<8x8xf32>
    tpu.vector_store %arg11[%c0_16, %c0_17], %39 {strides = array<i32>} : memref<16x32xf32, #tpu.memory_space<vmem>>, vector<8x8xf32>,
    %41 = vector.extract_strided_slice %12 {offsets = [0, 8], sizes = [8, 8], strides = [1, 1]} : vector<8x32xf32> to vector<8x8xf32>
    %42 = vector.extract_strided_slice %15 {offsets = [8, 0], sizes = [8, 8], strides = [1, 1]} : vector<32x8xf32> to vector<8x8xf32>
    %43 = vector.extract_strided_slice %14 {offsets = [0, 8], sizes = [8, 8], strides = [1, 1]} : vector<8x32xf32> to vector<8x8xf32>
    %cst_18 = arith.constant dense<0.000000e+00> : vector<8x8xf32>
    %44 = tpu.matmul %41, %42, %cst_18 {dimension_numbers = #tpu.dot_dimension_numbers<[1], [0], [0], [1], [0, 0, 1, 1], [], []>} : vector<8x8xf32>, vector<8x8xf32>, vector<8x8xf32> -> vector<8x8xf32>
    %45 = vector.broadcast %11 : f32 to vector<8x8xf32>
    %46 = arith.mulf %44, %45 : vector<8x8xf32>
    %cst_19 = arith.constant -1.000000e-10 : f32
    %47 = vector.shape_cast %18 : vector<1x8xi1> to vector<1x8xi1>
    %48 = vector.broadcast %47 : vector<1x8xi1> to vector<8x8xi1>
    %49 = vector.broadcast %cst_19 : f32 to vector<8x8xf32>
    %50 = arith.select %48, %49, %46 : vector<8x8xi1>, vector<8x8xf32>
    %cst_20 = arith.constant dense<0xFF800000> : vector<8xf32>
    %51 = vector.multi_reduction <maximumf>, %50, %cst_20 [1] : vector<8x8xf32> to vector<8xf32>
    %52 = vector.shape_cast %51 : vector<8xf32> to vector<8x1xf32>
    %53 = vector.broadcast %52 : vector<8x1xf32> to vector<8x8xf32>
    %54 = arith.subf %50, %53 : vector<8x8xf32>
    %55 = math.exp %54 : vector<8x8xf32>
    %cst_21 = arith.constant dense<0.000000e+00> : vector<8xf32>
    %56 = vector.multi_reduction <add>, %55, %cst_21 [1] : vector<8x8xf32> to vector<8xf32>
    %57 = vector.shape_cast %56 : vector<8xf32> to vector<8x1xf32>
    %58 = vector.broadcast %57 : vector<8x1xf32> to vector<8x8xf32>
    %59 = arith.divf %55, %58 : vector<8x8xf32>
    %c0_22 = arith.constant 0 : index
    %c8 = arith.constant 8 : index
    %60 = vector.load %arg10[%c0_22, %c8] : memref<16x32xf32, #tpu.memory_space<vmem>>, vector<8x8xf32>
    tpu.vector_store %arg10[%c0_22, %c8], %59 {strides = array<i32>} : memref<16x32xf32, #tpu.memory_space<vmem>>, vector<8x8xf32>,
    %cst_23 = arith.constant dense<0.000000e+00> : vector<8x8xf32>
    %61 = tpu.matmul %59, %43, %cst_23 {dimension_numbers = #tpu.dot_dimension_numbers<[1], [0], [0], [1], [0, 0, 1, 1], [], []>} : vector<8x8xf32>, vector<8x8xf32>, vector<8x8xf32> -> vector<8x8xf32>
    %c0_24 = arith.constant 0 : index
    %c8_25 = arith.constant 8 : index
    %62 = vector.load %arg11[%c0_24, %c8_25] : memref<16x32xf32, #tpu.memory_space<vmem>>, vector<8x8xf32>
    tpu.vector_store %arg11[%c0_24, %c8_25], %61 {strides = array<i32>} : memref<16x32xf32, #tpu.memory_space<vmem>>, vector<8x8xf32>,
    %63 = vector.extract_strided_slice %12 {offsets = [0, 16], sizes = [8, 8], strides = [1, 1]} : vector<8x32xf32> to vector<8x8xf32>
    %64 = vector.extract_strided_slice %15 {offsets = [16, 0], sizes = [8, 8], strides = [1, 1]} : vector<32x8xf32> to vector<8x8xf32>
    %65 = vector.extract_strided_slice %14 {offsets = [0, 16], sizes = [8, 8], strides = [1, 1]} : vector<8x32xf32> to vector<8x8xf32>
    %cst_26 = arith.constant dense<0.000000e+00> : vector<8x8xf32>
    %66 = tpu.matmul %63, %64, %cst_26 {dimension_numbers = #tpu.dot_dimension_numbers<[1], [0], [0], [1], [0, 0, 1, 1], [], []>} : vector<8x8xf32>, vector<8x8xf32>, vector<8x8xf32> -> vector<8x8xf32>
    %67 = vector.broadcast %11 : f32 to vector<8x8xf32>
    %68 = arith.mulf %66, %67 : vector<8x8xf32>
    %cst_27 = arith.constant -1.000000e-10 : f32
    %69 = vector.shape_cast %18 : vector<1x8xi1> to vector<1x8xi1>
    %70 = vector.broadcast %69 : vector<1x8xi1> to vector<8x8xi1>
    %71 = vector.broadcast %cst_27 : f32 to vector<8x8xf32>
    %72 = arith.select %70, %71, %68 : vector<8x8xi1>, vector<8x8xf32>
    %cst_28 = arith.constant dense<0xFF800000> : vector<8xf32>
    %73 = vector.multi_reduction <maximumf>, %72, %cst_28 [1] : vector<8x8xf32> to vector<8xf32>
    %74 = vector.shape_cast %73 : vector<8xf32> to vector<8x1xf32>
    %75 = vector.broadcast %74 : vector<8x1xf32> to vector<8x8xf32>
    %76 = arith.subf %72, %75 : vector<8x8xf32>
    %77 = math.exp %76 : vector<8x8xf32>
    %cst_29 = arith.constant dense<0.000000e+00> : vector<8xf32>
    %78 = vector.multi_reduction <add>, %77, %cst_29 [1] : vector<8x8xf32> to vector<8xf32>
    %79 = vector.shape_cast %78 : vector<8xf32> to vector<8x1xf32>
    %80 = vector.broadcast %79 : vector<8x1xf32> to vector<8x8xf32>
    %81 = arith.divf %77, %80 : vector<8x8xf32>
    %c0_30 = arith.constant 0 : index
    %c16 = arith.constant 16 : index
    %82 = vector.load %arg10[%c0_30, %c16] : memref<16x32xf32, #tpu.memory_space<vmem>>, vector<8x8xf32>
    tpu.vector_store %arg10[%c0_30, %c16], %81 {strides = array<i32>} : memref<16x32xf32, #tpu.memory_space<vmem>>, vector<8x8xf32>,
    %cst_31 = arith.constant dense<0.000000e+00> : vector<8x8xf32>
    %83 = tpu.matmul %81, %65, %cst_31 {dimension_numbers = #tpu.dot_dimension_numbers<[1], [0], [0], [1], [0, 0, 1, 1], [], []>} : vector<8x8xf32>, vector<8x8xf32>, vector<8x8xf32> -> vector<8x8xf32>
    %c0_32 = arith.constant 0 : index
    %c16_33 = arith.constant 16 : index
    %84 = vector.load %arg11[%c0_32, %c16_33] : memref<16x32xf32, #tpu.memory_space<vmem>>, vector<8x8xf32>
    tpu.vector_store %arg11[%c0_32, %c16_33], %83 {strides = array<i32>} : memref<16x32xf32, #tpu.memory_space<vmem>>, vector<8x8xf32>,
    %85 = vector.extract_strided_slice %12 {offsets = [0, 24], sizes = [8, 8], strides = [1, 1]} : vector<8x32xf32> to vector<8x8xf32>
    %86 = vector.extract_strided_slice %15 {offsets = [24, 0], sizes = [8, 8], strides = [1, 1]} : vector<32x8xf32> to vector<8x8xf32>
    %87 = vector.extract_strided_slice %14 {offsets = [0, 24], sizes = [8, 8], strides = [1, 1]} : vector<8x32xf32> to vector<8x8xf32>
    %cst_34 = arith.constant dense<0.000000e+00> : vector<8x8xf32>
    %88 = tpu.matmul %85, %86, %cst_34 {dimension_numbers = #tpu.dot_dimension_numbers<[1], [0], [0], [1], [0, 0, 1, 1], [], []>} : vector<8x8xf32>, vector<8x8xf32>, vector<8x8xf32> -> vector<8x8xf32>
    %89 = vector.broadcast %11 : f32 to vector<8x8xf32>
    %90 = arith.mulf %88, %89 : vector<8x8xf32>
    %cst_35 = arith.constant -1.000000e-10 : f32
    %91 = vector.shape_cast %18 : vector<1x8xi1> to vector<1x8xi1>
    %92 = vector.broadcast %91 : vector<1x8xi1> to vector<8x8xi1>
    %93 = vector.broadcast %cst_35 : f32 to vector<8x8xf32>
    %94 = arith.select %92, %93, %90 : vector<8x8xi1>, vector<8x8xf32>
    %cst_36 = arith.constant dense<0xFF800000> : vector<8xf32>
    %95 = vector.multi_reduction <maximumf>, %94, %cst_36 [1] : vector<8x8xf32> to vector<8xf32>
    %96 = vector.shape_cast %95 : vector<8xf32> to vector<8x1xf32>
    %97 = vector.broadcast %96 : vector<8x1xf32> to vector<8x8xf32>
    %98 = arith.subf %94, %97 : vector<8x8xf32>
    %99 = math.exp %98 : vector<8x8xf32>
    %cst_37 = arith.constant dense<0.000000e+00> : vector<8xf32>
    %100 = vector.multi_reduction <add>, %99, %cst_37 [1] : vector<8x8xf32> to vector<8xf32>
    %101 = vector.shape_cast %100 : vector<8xf32> to vector<8x1xf32>
    %102 = vector.broadcast %101 : vector<8x1xf32> to vector<8x8xf32>
    %103 = arith.divf %99, %102 : vector<8x8xf32>
    %c0_38 = arith.constant 0 : index
    %c24 = arith.constant 24 : index
    %104 = vector.load %arg10[%c0_38, %c24] : memref<16x32xf32, #tpu.memory_space<vmem>>, vector<8x8xf32>
    tpu.vector_store %arg10[%c0_38, %c24], %103 {strides = array<i32>} : memref<16x32xf32, #tpu.memory_space<vmem>>, vector<8x8xf32>,
    %cst_39 = arith.constant dense<0.000000e+00> : vector<8x8xf32>
    %105 = tpu.matmul %103, %87, %cst_39 {dimension_numbers = #tpu.dot_dimension_numbers<[1], [0], [0], [1], [0, 0, 1, 1], [], []>} : vector<8x8xf32>, vector<8x8xf32>, vector<8x8xf32> -> vector<8x8xf32>
    %c0_40 = arith.constant 0 : index
    %c24_41 = arith.constant 24 : index
    %106 = vector.load %arg11[%c0_40, %c24_41] : memref<16x32xf32, #tpu.memory_space<vmem>>, vector<8x8xf32>
    tpu.vector_store %arg11[%c0_40, %c24_41], %105 {strides = array<i32>} : memref<16x32xf32, #tpu.memory_space<vmem>>, vector<8x8xf32>,
    %107 = vector.extract_strided_slice %7 {offsets = [8, 0], sizes = [8, 32], strides = [1, 1]} : vector<16x32xf32> to vector<8x32xf32>
    %108 = vector.extract_strided_slice %8 {offsets = [8, 0], sizes = [8, 32], strides = [1, 1]} : vector<16x32xf32> to vector<8x32xf32>
    %109 = vector.extract_strided_slice %9 {offsets = [8, 0], sizes = [8, 32], strides = [1, 1]} : vector<16x32xf32> to vector<8x32xf32>
    %110 = tpu.transpose %108, [1, 0] : vector<8x32xf32> -> vector<32x8xf32>
    %111 = vector.extract_strided_slice %1 {offsets = [1, 0], sizes = [1, 8], strides = [1, 1]} : vector<2x8xi32> to vector<1x8xi32>
    %c0_i32_42 = arith.constant 0 : i32
    %112 = vector.broadcast %c0_i32_42 : i32 to vector<1x8xi32>
    %113 = arith.cmpi eq, %111, %112 : vector<1x8xi32>
    %114 = vector.extract_strided_slice %107 {offsets = [0, 0], sizes = [8, 8], strides = [1, 1]} : vector<8x32xf32> to vector<8x8xf32>
    %115 = vector.extract_strided_slice %110 {offsets = [0, 0], sizes = [8, 8], strides = [1, 1]} : vector<32x8xf32> to vector<8x8xf32>
    %116 = vector.extract_strided_slice %109 {offsets = [0, 0], sizes = [8, 8], strides = [1, 1]} : vector<8x32xf32> to vector<8x8xf32>
    %cst_43 = arith.constant dense<0.000000e+00> : vector<8x8xf32>
    %117 = tpu.matmul %114, %115, %cst_43 {dimension_numbers = #tpu.dot_dimension_numbers<[1], [0], [0], [1], [0, 0, 1, 1], [], []>} : vector<8x8xf32>, vector<8x8xf32>, vector<8x8xf32> -> vector<8x8xf32>
    %118 = vector.broadcast %11 : f32 to vector<8x8xf32>
    %119 = arith.mulf %117, %118 : vector<8x8xf32>
    %cst_44 = arith.constant -1.000000e-10 : f32
    %120 = vector.shape_cast %113 : vector<1x8xi1> to vector<1x8xi1>
    %121 = vector.broadcast %120 : vector<1x8xi1> to vector<8x8xi1>
    %122 = vector.broadcast %cst_44 : f32 to vector<8x8xf32>
    %123 = arith.select %121, %122, %119 : vector<8x8xi1>, vector<8x8xf32>
    %cst_45 = arith.constant dense<0xFF800000> : vector<8xf32>
    %124 = vector.multi_reduction <maximumf>, %123, %cst_45 [1] : vector<8x8xf32> to vector<8xf32>
    %125 = vector.shape_cast %124 : vector<8xf32> to vector<8x1xf32>
    %126 = vector.broadcast %125 : vector<8x1xf32> to vector<8x8xf32>
    %127 = arith.subf %123, %126 : vector<8x8xf32>
    %128 = math.exp %127 : vector<8x8xf32>
    %cst_46 = arith.constant dense<0.000000e+00> : vector<8xf32>
    %129 = vector.multi_reduction <add>, %128, %cst_46 [1] : vector<8x8xf32> to vector<8xf32>
    %130 = vector.shape_cast %129 : vector<8xf32> to vector<8x1xf32>
    %131 = vector.broadcast %130 : vector<8x1xf32> to vector<8x8xf32>
    %132 = arith.divf %128, %131 : vector<8x8xf32>
    %c8_47 = arith.constant 8 : index
    %c0_48 = arith.constant 0 : index
    %133 = vector.load %arg10[%c8_47, %c0_48] : memref<16x32xf32, #tpu.memory_space<vmem>>, vector<8x8xf32>
    tpu.vector_store %arg10[%c8_47, %c0_48], %132 {strides = array<i32>} : memref<16x32xf32, #tpu.memory_space<vmem>>, vector<8x8xf32>,
    %cst_49 = arith.constant dense<0.000000e+00> : vector<8x8xf32>
    %134 = tpu.matmul %132, %116, %cst_49 {dimension_numbers = #tpu.dot_dimension_numbers<[1], [0], [0], [1], [0, 0, 1, 1], [], []>} : vector<8x8xf32>, vector<8x8xf32>, vector<8x8xf32> -> vector<8x8xf32>
    %c8_50 = arith.constant 8 : index
    %c0_51 = arith.constant 0 : index
    %135 = vector.load %arg11[%c8_50, %c0_51] : memref<16x32xf32, #tpu.memory_space<vmem>>, vector<8x8xf32>
    tpu.vector_store %arg11[%c8_50, %c0_51], %134 {strides = array<i32>} : memref<16x32xf32, #tpu.memory_space<vmem>>, vector<8x8xf32>,
    %136 = vector.extract_strided_slice %107 {offsets = [0, 8], sizes = [8, 8], strides = [1, 1]} : vector<8x32xf32> to vector<8x8xf32>
    %137 = vector.extract_strided_slice %110 {offsets = [8, 0], sizes = [8, 8], strides = [1, 1]} : vector<32x8xf32> to vector<8x8xf32>
    %138 = vector.extract_strided_slice %109 {offsets = [0, 8], sizes = [8, 8], strides = [1, 1]} : vector<8x32xf32> to vector<8x8xf32>
    %cst_52 = arith.constant dense<0.000000e+00> : vector<8x8xf32>
    %139 = tpu.matmul %136, %137, %cst_52 {dimension_numbers = #tpu.dot_dimension_numbers<[1], [0], [0], [1], [0, 0, 1, 1], [], []>} : vector<8x8xf32>, vector<8x8xf32>, vector<8x8xf32> -> vector<8x8xf32>
    %140 = vector.broadcast %11 : f32 to vector<8x8xf32>
    %141 = arith.mulf %139, %140 : vector<8x8xf32>
    %cst_53 = arith.constant -1.000000e-10 : f32
    %142 = vector.shape_cast %113 : vector<1x8xi1> to vector<1x8xi1>
    %143 = vector.broadcast %142 : vector<1x8xi1> to vector<8x8xi1>
    %144 = vector.broadcast %cst_53 : f32 to vector<8x8xf32>
    %145 = arith.select %143, %144, %141 : vector<8x8xi1>, vector<8x8xf32>
    %cst_54 = arith.constant dense<0xFF800000> : vector<8xf32>
    %146 = vector.multi_reduction <maximumf>, %145, %cst_54 [1] : vector<8x8xf32> to vector<8xf32>
    %147 = vector.shape_cast %146 : vector<8xf32> to vector<8x1xf32>
    %148 = vector.broadcast %147 : vector<8x1xf32> to vector<8x8xf32>
    %149 = arith.subf %145, %148 : vector<8x8xf32>
    %150 = math.exp %149 : vector<8x8xf32>
    %cst_55 = arith.constant dense<0.000000e+00> : vector<8xf32>
    %151 = vector.multi_reduction <add>, %150, %cst_55 [1] : vector<8x8xf32> to vector<8xf32>
    %152 = vector.shape_cast %151 : vector<8xf32> to vector<8x1xf32>
    %153 = vector.broadcast %152 : vector<8x1xf32> to vector<8x8xf32>
    %154 = arith.divf %150, %153 : vector<8x8xf32>
    %c8_56 = arith.constant 8 : index
    %c8_57 = arith.constant 8 : index
    %155 = vector.load %arg10[%c8_56, %c8_57] : memref<16x32xf32, #tpu.memory_space<vmem>>, vector<8x8xf32>
    tpu.vector_store %arg10[%c8_56, %c8_57], %154 {strides = array<i32>} : memref<16x32xf32, #tpu.memory_space<vmem>>, vector<8x8xf32>,
    %cst_58 = arith.constant dense<0.000000e+00> : vector<8x8xf32>
    %156 = tpu.matmul %154, %138, %cst_58 {dimension_numbers = #tpu.dot_dimension_numbers<[1], [0], [0], [1], [0, 0, 1, 1], [], []>} : vector<8x8xf32>, vector<8x8xf32>, vector<8x8xf32> -> vector<8x8xf32>
    %c8_59 = arith.constant 8 : index
    %c8_60 = arith.constant 8 : index
    %157 = vector.load %arg11[%c8_59, %c8_60] : memref<16x32xf32, #tpu.memory_space<vmem>>, vector<8x8xf32>
    tpu.vector_store %arg11[%c8_59, %c8_60], %156 {strides = array<i32>} : memref<16x32xf32, #tpu.memory_space<vmem>>, vector<8x8xf32>,
    %158 = vector.extract_strided_slice %107 {offsets = [0, 16], sizes = [8, 8], strides = [1, 1]} : vector<8x32xf32> to vector<8x8xf32>
    %159 = vector.extract_strided_slice %110 {offsets = [16, 0], sizes = [8, 8], strides = [1, 1]} : vector<32x8xf32> to vector<8x8xf32>
    %160 = vector.extract_strided_slice %109 {offsets = [0, 16], sizes = [8, 8], strides = [1, 1]} : vector<8x32xf32> to vector<8x8xf32>
    %cst_61 = arith.constant dense<0.000000e+00> : vector<8x8xf32>
    %161 = tpu.matmul %158, %159, %cst_61 {dimension_numbers = #tpu.dot_dimension_numbers<[1], [0], [0], [1], [0, 0, 1, 1], [], []>} : vector<8x8xf32>, vector<8x8xf32>, vector<8x8xf32> -> vector<8x8xf32>
    %162 = vector.broadcast %11 : f32 to vector<8x8xf32>
    %163 = arith.mulf %161, %162 : vector<8x8xf32>
    %cst_62 = arith.constant -1.000000e-10 : f32
    %164 = vector.shape_cast %113 : vector<1x8xi1> to vector<1x8xi1>
    %165 = vector.broadcast %164 : vector<1x8xi1> to vector<8x8xi1>
    %166 = vector.broadcast %cst_62 : f32 to vector<8x8xf32>
    %167 = arith.select %165, %166, %163 : vector<8x8xi1>, vector<8x8xf32>
    %cst_63 = arith.constant dense<0xFF800000> : vector<8xf32>
    %168 = vector.multi_reduction <maximumf>, %167, %cst_63 [1] : vector<8x8xf32> to vector<8xf32>
    %169 = vector.shape_cast %168 : vector<8xf32> to vector<8x1xf32>
    %170 = vector.broadcast %169 : vector<8x1xf32> to vector<8x8xf32>
    %171 = arith.subf %167, %170 : vector<8x8xf32>
    %172 = math.exp %171 : vector<8x8xf32>
    %cst_64 = arith.constant dense<0.000000e+00> : vector<8xf32>
    %173 = vector.multi_reduction <add>, %172, %cst_64 [1] : vector<8x8xf32> to vector<8xf32>
    %174 = vector.shape_cast %173 : vector<8xf32> to vector<8x1xf32>
    %175 = vector.broadcast %174 : vector<8x1xf32> to vector<8x8xf32>
    %176 = arith.divf %172, %175 : vector<8x8xf32>
    %c8_65 = arith.constant 8 : index
    %c16_66 = arith.constant 16 : index
    %177 = vector.load %arg10[%c8_65, %c16_66] : memref<16x32xf32, #tpu.memory_space<vmem>>, vector<8x8xf32>
    tpu.vector_store %arg10[%c8_65, %c16_66], %176 {strides = array<i32>} : memref<16x32xf32, #tpu.memory_space<vmem>>, vector<8x8xf32>,
    %cst_67 = arith.constant dense<0.000000e+00> : vector<8x8xf32>
    %178 = tpu.matmul %176, %160, %cst_67 {dimension_numbers = #tpu.dot_dimension_numbers<[1], [0], [0], [1], [0, 0, 1, 1], [], []>} : vector<8x8xf32>, vector<8x8xf32>, vector<8x8xf32> -> vector<8x8xf32>
    %c8_68 = arith.constant 8 : index
    %c16_69 = arith.constant 16 : index
    %179 = vector.load %arg11[%c8_68, %c16_69] : memref<16x32xf32, #tpu.memory_space<vmem>>, vector<8x8xf32>
    tpu.vector_store %arg11[%c8_68, %c16_69], %178 {strides = array<i32>} : memref<16x32xf32, #tpu.memory_space<vmem>>, vector<8x8xf32>,
    %180 = vector.extract_strided_slice %107 {offsets = [0, 24], sizes = [8, 8], strides = [1, 1]} : vector<8x32xf32> to vector<8x8xf32>
    %181 = vector.extract_strided_slice %110 {offsets = [24, 0], sizes = [8, 8], strides = [1, 1]} : vector<32x8xf32> to vector<8x8xf32>
    %182 = vector.extract_strided_slice %109 {offsets = [0, 24], sizes = [8, 8], strides = [1, 1]} : vector<8x32xf32> to vector<8x8xf32>
    %cst_70 = arith.constant dense<0.000000e+00> : vector<8x8xf32>
    %183 = tpu.matmul %180, %181, %cst_70 {dimension_numbers = #tpu.dot_dimension_numbers<[1], [0], [0], [1], [0, 0, 1, 1], [], []>} : vector<8x8xf32>, vector<8x8xf32>, vector<8x8xf32> -> vector<8x8xf32>
    %184 = vector.broadcast %11 : f32 to vector<8x8xf32>
    %185 = arith.mulf %183, %184 : vector<8x8xf32>
    %cst_71 = arith.constant -1.000000e-10 : f32
    %186 = vector.shape_cast %113 : vector<1x8xi1> to vector<1x8xi1>
    %187 = vector.broadcast %186 : vector<1x8xi1> to vector<8x8xi1>
    %188 = vector.broadcast %cst_71 : f32 to vector<8x8xf32>
    %189 = arith.select %187, %188, %185 : vector<8x8xi1>, vector<8x8xf32>
    %cst_72 = arith.constant dense<0xFF800000> : vector<8xf32>
    %190 = vector.multi_reduction <maximumf>, %189, %cst_72 [1] : vector<8x8xf32> to vector<8xf32>
    %191 = vector.shape_cast %190 : vector<8xf32> to vector<8x1xf32>
    %192 = vector.broadcast %191 : vector<8x1xf32> to vector<8x8xf32>
    %193 = arith.subf %189, %192 : vector<8x8xf32>
    %194 = math.exp %193 : vector<8x8xf32>
    %cst_73 = arith.constant dense<0.000000e+00> : vector<8xf32>
    %195 = vector.multi_reduction <add>, %194, %cst_73 [1] : vector<8x8xf32> to vector<8xf32>
    %196 = vector.shape_cast %195 : vector<8xf32> to vector<8x1xf32>
    %197 = vector.broadcast %196 : vector<8x1xf32> to vector<8x8xf32>
    %198 = arith.divf %194, %197 : vector<8x8xf32>
    %c8_74 = arith.constant 8 : index
    %c24_75 = arith.constant 24 : index
    %199 = vector.load %arg10[%c8_74, %c24_75] : memref<16x32xf32, #tpu.memory_space<vmem>>, vector<8x8xf32>
    tpu.vector_store %arg10[%c8_74, %c24_75], %198 {strides = array<i32>} : memref<16x32xf32, #tpu.memory_space<vmem>>, vector<8x8xf32>,
    %cst_76 = arith.constant dense<0.000000e+00> : vector<8x8xf32>
    %200 = tpu.matmul %198, %182, %cst_76 {dimension_numbers = #tpu.dot_dimension_numbers<[1], [0], [0], [1], [0, 0, 1, 1], [], []>} : vector<8x8xf32>, vector<8x8xf32>, vector<8x8xf32> -> vector<8x8xf32>
    %c8_77 = arith.constant 8 : index
    %c24_78 = arith.constant 24 : index
    %201 = vector.load %arg11[%c8_77, %c24_78] : memref<16x32xf32, #tpu.memory_space<vmem>>, vector<8x8xf32>
    tpu.vector_store %arg11[%c8_77, %c24_78], %200 {strides = array<i32>} : memref<16x32xf32, #tpu.memory_space<vmem>>, vector<8x8xf32>,
    %c0_79 = arith.constant 0 : index
    %c0_80 = arith.constant 0 : index
    %202 = vector.load %arg11[%c0_79, %c0_80] : memref<16x32xf32, #tpu.memory_space<vmem>>, vector<16x32xf32>
    %203 = vector.extract_strided_slice %2 {offsets = [0, 96], sizes = [32, 32], strides = [1, 1]} : vector<32x128xf32> to vector<32x32xf32>
    %204 = vector.extract_strided_slice %3 {offsets = [0, 96], sizes = [1, 32], strides = [1, 1]} : vector<1x128xf32> to vector<1x32xf32>
    %cst_81 = arith.constant dense<0.000000e+00> : vector<16x32xf32>
    %205 = tpu.matmul %202, %203, %cst_81 {dimension_numbers = #tpu.dot_dimension_numbers<[1], [0], [0], [1], [0, 0, 1, 1], [], []>} : vector<16x32xf32>, vector<32x32xf32>, vector<16x32xf32> -> vector<16x32xf32>
    %206 = vector.broadcast %204 : vector<1x32xf32> to vector<16x32xf32>
    %207 = arith.addf %205, %206 : vector<16x32xf32>
    %c0_82 = arith.constant 0 : index
    %c0_83 = arith.constant 0 : index
    %208 = vector.load %arg8[%c0_82, %c0_83] : memref<4x32xf32, #tpu.memory_space<vmem>>, vector<4x32xf32>
    %209 = arith.addf %0, %207 : vector<16x32xf32>
    %210 = vector.extract_strided_slice %208 {offsets = [0, 0], sizes = [1, 32], strides = [1, 1]} : vector<4x32xf32> to vector<1x32xf32>
    %211 = vector.extract_strided_slice %208 {offsets = [1, 0], sizes = [1, 32], strides = [1, 1]} : vector<4x32xf32> to vector<1x32xf32>
    %cst_84 = arith.constant dense<0.000000e+00> : vector<16xf32>
    %212 = vector.multi_reduction <add>, %209, %cst_84 [1] : vector<16x32xf32> to vector<16xf32>
    %213 = vector.shape_cast %212 : vector<16xf32> to vector<16x1xf32>
    %cst_85 = arith.constant 3.200000e+01 : f32
    %214 = vector.broadcast %cst_85 : f32 to vector<16x1xf32>
    %215 = arith.divf %213, %214 : vector<16x1xf32>
    %216 = vector.broadcast %215 : vector<16x1xf32> to vector<16x32xf32>
    %217 = arith.subf %209, %216 : vector<16x32xf32>
    %218 = arith.mulf %217, %217 : vector<16x32xf32>
    %cst_86 = arith.constant dense<0.000000e+00> : vector<16xf32>
    %219 = vector.multi_reduction <add>, %218, %cst_86 [1] : vector<16x32xf32> to vector<16xf32>
    %220 = vector.shape_cast %219 : vector<16xf32> to vector<16x1xf32>
    %cst_87 = arith.constant 3.200000e+01 : f32
    %221 = vector.broadcast %cst_87 : f32 to vector<16x1xf32>
    %222 = arith.divf %220, %221 : vector<16x1xf32>
    %223 = vector.broadcast %215 : vector<16x1xf32> to vector<16x32xf32>
    %224 = arith.subf %209, %223 : vector<16x32xf32>
    %cst_88 = arith.constant 9.99999974E-6 : f32
    %225 = vector.broadcast %cst_88 : f32 to vector<16x1xf32>
    %226 = arith.addf %222, %225 : vector<16x1xf32>
    %227 = math.rsqrt %226 : vector<16x1xf32>
    %228 = vector.broadcast %227 : vector<16x1xf32> to vector<16x32xf32>
    %229 = arith.mulf %224, %228 : vector<16x32xf32>
    %230 = vector.broadcast %210 : vector<1x32xf32> to vector<16x32xf32>
    %231 = arith.mulf %229, %230 : vector<16x32xf32>
    %232 = vector.broadcast %211 : vector<1x32xf32> to vector<16x32xf32>
    %233 = arith.addf %231, %232 : vector<16x32xf32>
    %c0_89 = arith.constant 0 : index
    %c0_90 = arith.constant 0 : index
    %234 = vector.load %arg7[%c0_89, %c0_90] : memref<1x96xf32, #tpu.memory_space<vmem>>, vector<1x96xf32>
    %c0_91 = arith.constant 0 : index
    %c0_92 = arith.constant 0 : index
    %235 = vector.load %arg5[%c0_91, %c0_92] : memref<32x64xf32, #tpu.memory_space<vmem>>, vector<32x64xf32>
    %cst_93 = arith.constant dense<0.000000e+00> : vector<16x64xf32>
    %236 = tpu.matmul %233, %235, %cst_93 {dimension_numbers = #tpu.dot_dimension_numbers<[1], [0], [0], [1], [0, 0, 1, 1], [], []>} : vector<16x32xf32>, vector<32x64xf32>, vector<16x64xf32> -> vector<16x64xf32>
    %237 = vector.extract_strided_slice %234 {offsets = [0, 0], sizes = [1, 64], strides = [1, 1]} : vector<1x96xf32> to vector<1x64xf32>
    %238 = vector.broadcast %237 : vector<1x64xf32> to vector<16x64xf32>
    %239 = arith.addf %236, %238 : vector<16x64xf32>
    %cst_94 = arith.constant 0.000000e+00 : f32
    %240 = vector.broadcast %cst_94 : f32 to vector<16x64xf32>
    %241 = arith.maximumf %239, %240 : vector<16x64xf32>
    %c0_95 = arith.constant 0 : index
    %c0_96 = arith.constant 0 : index
    %242 = vector.load %arg6[%c0_95, %c0_96] : memref<64x32xf32, #tpu.memory_space<vmem>>, vector<64x32xf32>
    %cst_97 = arith.constant dense<0.000000e+00> : vector<16x32xf32>
    %243 = tpu.matmul %241, %242, %cst_97 {dimension_numbers = #tpu.dot_dimension_numbers<[1], [0], [0], [1], [0, 0, 1, 1], [], []>} : vector<16x64xf32>, vector<64x32xf32>, vector<16x32xf32> -> vector<16x32xf32>
    %244 = vector.extract_strided_slice %234 {offsets = [0, 64], sizes = [1, 32], strides = [1, 1]} : vector<1x96xf32> to vector<1x32xf32>
    %245 = vector.broadcast %244 : vector<1x32xf32> to vector<16x32xf32>
    %246 = arith.addf %243, %245 : vector<16x32xf32>
    %247 = arith.addf %233, %246 : vector<16x32xf32>
    %248 = vector.extract_strided_slice %208 {offsets = [2, 0], sizes = [1, 32], strides = [1, 1]} : vector<4x32xf32> to vector<1x32xf32>
    %249 = vector.extract_strided_slice %208 {offsets = [3, 0], sizes = [1, 32], strides = [1, 1]} : vector<4x32xf32> to vector<1x32xf32>
    %cst_98 = arith.constant dense<0.000000e+00> : vector<16xf32>
    %250 = vector.multi_reduction <add>, %247, %cst_98 [1] : vector<16x32xf32> to vector<16xf32>
    %251 = vector.shape_cast %250 : vector<16xf32> to vector<16x1xf32>
    %cst_99 = arith.constant 3.200000e+01 : f32
    %252 = vector.broadcast %cst_99 : f32 to vector<16x1xf32>
    %253 = arith.divf %251, %252 : vector<16x1xf32>
    %254 = vector.broadcast %253 : vector<16x1xf32> to vector<16x32xf32>
    %255 = arith.subf %247, %254 : vector<16x32xf32>
    %256 = arith.mulf %255, %255 : vector<16x32xf32>
    %cst_100 = arith.constant dense<0.000000e+00> : vector<16xf32>
    %257 = vector.multi_reduction <add>, %256, %cst_100 [1] : vector<16x32xf32> to vector<16xf32>
    %258 = vector.shape_cast %257 : vector<16xf32> to vector<16x1xf32>
    %cst_101 = arith.constant 3.200000e+01 : f32
    %259 = vector.broadcast %cst_101 : f32 to vector<16x1xf32>
    %260 = arith.divf %258, %259 : vector<16x1xf32>
    %261 = vector.broadcast %253 : vector<16x1xf32> to vector<16x32xf32>
    %262 = arith.subf %247, %261 : vector<16x32xf32>
    %cst_102 = arith.constant 9.99999974E-6 : f32
    %263 = vector.broadcast %cst_102 : f32 to vector<16x1xf32>
    %264 = arith.addf %260, %263 : vector<16x1xf32>
    %265 = math.rsqrt %264 : vector<16x1xf32>
    %266 = vector.broadcast %265 : vector<16x1xf32> to vector<16x32xf32>
    %267 = arith.mulf %262, %266 : vector<16x32xf32>
    %268 = vector.broadcast %248 : vector<1x32xf32> to vector<16x32xf32>
    %269 = arith.mulf %267, %268 : vector<16x32xf32>
    %270 = vector.broadcast %249 : vector<1x32xf32> to vector<16x32xf32>
    %271 = arith.addf %269, %270 : vector<16x32xf32>
    %c0_103 = arith.constant 0 : index
    %c0_104 = arith.constant 0 : index
    %272 = vector.load %arg9[%c0_103, %c0_104] : memref<16x32xf32, #tpu.memory_space<vmem>>, vector<16x32xf32>
    tpu.vector_store %arg9[%c0_103, %c0_104], %271 {strides = array<i32>} : memref<16x32xf32, #tpu.memory_space<vmem>>, vector<16x32xf32>,
    return
  }
  func.func @transform_0(%arg0: i32) -> (i32, i32) {
    %c0_i32 = arith.constant 0 : i32
    %c0_i32_0 = arith.constant 0 : i32
    %c0_i32_1 = arith.constant 0 : i32
    return %c0_i32, %c0_i32_0 : i32, i32
  }
  func.func @transform_1(%arg0: i32) -> (i32, i32) {
    %c0_i32 = arith.constant 0 : i32
    %c0_i32_0 = arith.constant 0 : i32
    %c0_i32_1 = arith.constant 0 : i32
    return %c0_i32, %c0_i32_0 : i32, i32
  }
  func.func @transform_2(%arg0: i32) -> (i32, i32) {
    %c0_i32 = arith.constant 0 : i32
    %c0_i32_0 = arith.constant 0 : i32
    %c0_i32_1 = arith.constant 0 : i32
    return %c0_i32, %c0_i32_0 : i32, i32
  }
  func.func @transform_3(%arg0: i32) -> (i32, i32) {
    %c0_i32 = arith.constant 0 : i32
    %c0_i32_0 = arith.constant 0 : i32
    %c0_i32_1 = arith.constant 0 : i32
    return %c0_i32, %c0_i32_0 : i32, i32
  }
  func.func @transform_4(%arg0: i32) -> (i32, i32) {
    %c0_i32 = arith.constant 0 : i32
    %c0_i32_0 = arith.constant 0 : i32
    %c0_i32_1 = arith.constant 0 : i32
    return %c0_i32, %c0_i32_0 : i32, i32
  }
  func.func @transform_5(%arg0: i32) -> (i32, i32) {
    %c0_i32 = arith.constant 0 : i32
    %c0_i32_0 = arith.constant 0 : i32
    %c0_i32_1 = arith.constant 0 : i32
    return %c0_i32, %c0_i32_0 : i32, i32
  }
  func.func @transform_6(%arg0: i32) -> (i32, i32) {
    %c0_i32 = arith.constant 0 : i32
    %c0_i32_0 = arith.constant 0 : i32
    %c0_i32_1 = arith.constant 0 : i32
    return %c0_i32, %c0_i32_0 : i32, i32
  }
  func.func @transform_7(%arg0: i32) -> (i32, i32) {
    %c0_i32 = arith.constant 0 : i32
    %c0_i32_0 = arith.constant 0 : i32
    %c0_i32_1 = arith.constant 0 : i32
    return %c0_i32, %c0_i32_0 : i32, i32
  }
  func.func @transform_8(%arg0: i32) -> (i32, i32) {
    %c0_i32 = arith.constant 0 : i32
    %c0_i32_0 = arith.constant 0 : i32
    %c0_i32_1 = arith.constant 0 : i32
    return %c0_i32, %c0_i32_0 : i32, i32
  }
  func.func @transform_9(%arg0: i32) -> (i32, i32) {
    %c0_i32 = arith.constant 0 : i32
    %c0_i32_0 = arith.constant 0 : i32
    %c0_i32_1 = arith.constant 0 : i32
    return %c0_i32, %c0_i32_0 : i32, i32
  }
}

</mosaic_0001>

<bundles_post_ra>
// kernel: encoder_layer.1
= control target key start
LH: loop header
LB: loop body
LE: loop exit
PB: predicated region body
PF: predicated region fallthrough
CT: control target
= control target key end

     0   :  { %vm46_vm0 = vcmask 261120   ;;  %s2679_s0 = inlined_call_operand.vmem [shape: f32[16,32], index: 0, kind: input, shape index: {}]   ;;  %s2680_s1 = inlined_call_operand.vmem [shape: s32[2,8], index: 1, kind: input, shape index: {}]   ;;  %s2681_s2 = inlined_call_operand.vmem [shape: f32[32,128], index: 2, kind: input, shape index: {}]   ;;  %s2682_s3 = inlined_call_operand.vmem [shape: f32[1,128], index: 3, kind: input, shape index: {}]   ;;  %s2683_s4 = inlined_call_operand.vmem [shape: f32[32,64], index: 4, kind: input, shape index: {}]   ;;  %s2684_s5 = inlined_call_operand.vmem [shape: f32[64,32], index: 5, kind: input, shape index: {}]   ;;  %s2685_s6 = inlined_call_operand.vmem [shape: f32[1,96], index: 6, kind: input, shape index: {}]   ;;  %s2686_s7 = inlined_call_operand.vmem [shape: f32[4,32], index: 7, kind: input, shape index: {}]   ;;  %s2687_s8 = inlined_call_operand.hbm [shape: f32[16,32], index: 8, kind: output, shape index: {0}]   ;;  %s2688_s9 = inlined_call_operand.vmem [shape: f32[16,32], index: 9, kind: output, shape index: {1}]  }
   0x1   :  { %v2310_v0 = vld [vmem:[%s2681_s2 + $0x18] sm:$0xff]  ;;  %v2315_v1 = vld [vmem:[%s2681_s2 + $0x10] sm:$0xff]  ;;  %v2321_v2 = vld [vmem:[%s2679_s0] sm:$0xff] }
   0x2   :  { %2023 = vmatprep.subr.mxu1 %v2310_v0  ;;  %v2327_v3 = vld [vmem:[%s2681_s2 + $0x8] sm:$0xff]  ;;  %2031 = vmatprep.mubr.msk.f32.mxu1 %vm46_vm0, %v2321_v2 }
   0x3   :  { %2024 = vmatpush3.msra.mxu1 %v2310_v0 }
   0x4   :  { %15 = vsyncpa [#allocation4], 0  ;;  %2025 = vmatprep.subr.mxu1 %v2315_v1  ;;  %v2336_v4 = vld [vmem:[%s2681_s2] sm:$0xff]  ;;  %v2343_v5 = vld [vmem:[%s2679_s0 + $0x8] sm:$0xff]  ;;  %v2237_v6 = vmov 0.0   ;;  %vm2238_vm1 = vmmov 0   ;;  %v209_v27 = vlaneseq }
   0x5   :  { %2026 = vmatpush3.msra.mxu1 %v2315_v1  ;;  %2044 = vmatprep.subr.mxu0 %v2237_v6  ;;  %v2358_v8 = vld [vmem:[%s2682_s3] ss:$0 sm:$0xff]  ;;  %s2239_s21 = smov 120   ;;  %s2240_s22 = smov 96   ;;  %vm132_vm2 = vcmask 64512   ;;  %v2248_v31 = vmov 0  }
   0x6   :  { %2027 = vmatprep.subr.mxu1 %v2327_v3  ;;  %2046 = vmatprep.mubr.msk.f32.mxu0 %vm2238_vm1, %v2237_v6  ;;  %s2241_s23 = smov 80   ;;  %s2242_s24 = smov 88   ;;  %v34_v28 = vld [vmem:[%s2680_s1] sm:$0x3]  ;;  %v2427_v29 = vshrl.u32 %v209_v27, 7  ;;  %vm399_vm6 = vcmask 130112  }
   0x7   :  { %2028 = vmatpush3.msra.mxu1 %v2327_v3  ;;  %s2243_s25 = smov 72   ;;  %s2244_s3 = smov 112   ;;  %vm128_vm3 = vcmp.eq.s32.totalorder %v34_v28, 0  ;;  %vm576_vm7 = vcmask 195712   ;;  %vm753_vm8 = vcmask 261312   ;;  %vm1785_vm9 = vcmask 523264  }
   0x8   :  { %2029 = vmatprep.subr.mxu1 %v2336_v4  ;;  %s2245_s26 = smov 104   ;;  %s2246_s27 = smov 56   ;;  %v211_v30 = vsub.s32 0, %v2427_v29  ;;  %v208_v32 = vsel %vm128_vm3, 1, %v2248_v31  ;;  %v915_v45 = vsub.s32 1, %v2427_v29 }
   0x9   :  { %2030 = vmatpush3.msra.mxu1 %v2336_v4  ;;  %s2247_s28 = smov 64   ;;  %s2249_s1 = smov 40  }
   0xa   :  { %2032 = vmatmul.mubr.msk.f32.vlgmr.msra.gmra.mxu1 %vm46_vm0, %v2343_v5  ;;  %2034 = vmatprep.subr.mxu1 %v2237_v6  ;;  %v212_v33 = vrot.slane %v208_v32, %v211_v30  ;;  %v916_v51 = vrot.slane %v208_v32, %v915_v45  ;;  %s2250_s10 = smov 48   ;;  %s2251_s15 = smov 8  }
   0xb   :  { %2036 = vmatprep.mubr.msk.f32.mxu1 %vm2238_vm1, %v2237_v6  ;;  %s2252_s16 = smov 16   ;;  %s2253_s17 = smov 24  }
   0xc   :  { %vm213_vm4 = vcmp.eq.s32.totalorder %v212_v33, 1  ;;  %vm917_vm5 = vcmp.eq.s32.totalorder %v916_v51, 1  ;;  %s2254_s18 = smov 32  }
  0xca   :  { %v2033_v7 = vpop.f32.mrf.mxu1 }
  0xcb   :  { %v2370_v11 = vadd.f32 %v2033_v7, %v2358_v8 }
  0xcc   :  { %v119_v9 = vpop.f32.mrf.mxu1 }
  0xcd   :  { %v2361_v10 = vadd.f32 %v2358_v8, %v119_v9 }
  0xcf   :  { %304 = vrot.lane.b32.xlu1 %v2361_v10, %s2239_s21  ;;  %130 = vrot.lane.b32.xlu0 %v2361_v10, %s2240_s22 }
  0xd3   :  { %483 = vrot.lane.b32.xlu1 %v2361_v10, %s2241_s23  ;;  %306 = vrot.lane.b32.xlu0 %v2361_v10, %s2242_s24 }
  0xd7   :  { %660 = vrot.lane.b32.xlu1 %v2361_v10, %s2243_s25  ;;  %481 = vrot.lane.b32.xlu0 %v2361_v10, %s2244_s3 }
  0xdb   :  { %836 = vrot.lane.b32.xlu1 %v2370_v11, %s2240_s22  ;;  %658 = vrot.lane.b32.xlu0 %v2361_v10, %s2245_s26 }
  0xdf   :  { %1008 = vrot.lane.b32.xlu1 %v2370_v11, %s2239_s21  ;;  %1010 = vrot.lane.b32.xlu0 %v2370_v11, %s2242_s24 }
  0xe3   :  { %1184 = vrot.lane.b32.xlu1 %v2370_v11, %s2244_s3  ;;  %1186 = vrot.lane.b32.xlu0 %v2370_v11, %s2241_s23 }
  0xe7   :  { %1360 = vrot.lane.b32.xlu1 %v2370_v11, %s2245_s26  ;;  %1362 = vrot.lane.b32.xlu0 %v2370_v11, %s2243_s25 }
  0xeb   :  { %401 = vrot.lane.b32.xlu1 %v2361_v10, %s2246_s27  ;;  %227 = vrot.lane.b32.xlu0 %v2361_v10, %s2247_s28 }
 0x141   :  { %v305_v12 = vpop.permute.xlu1 %304  ;;  %v131_v13 = vpop.permute.xlu0 %130 }
 0x142   :  { %2035 = vmatpush3.xpose.msk.msra.mxu1 %vm132_vm2, %v131_v13 }
 0x143   :  { %2039 = vmatprep.subr.mxu1 %v2237_v6 }
 0x145   :  { %v484_v14 = vpop.permute.xlu1 %483  ;;  %2037 = vmatmul.mubr.msk.f32.vlgmr.msra.gmra.mxu1 %vm132_vm2, %v2361_v10  ;;  %v307_v15 = vpop.permute.xlu0 %306 }
 0x146   :  { %2045 = vmatpush3.xpose.msk.msra.mxu0 %vm132_vm2, %v307_v15  ;;  %2041 = vmatprep.mubr.msk.f32.mxu1 %vm2238_vm1, %v2237_v6 }
 0x147   :  { %2054 = vmatprep.subr.mxu0 %v2237_v6 }
 0x149   :  { %v661_v16 = vpop.permute.xlu1 %660  ;;  %2047 = vmatmul.mubr.msk.f32.vlgmr.msra.gmra.mxu0 %vm132_vm2, %v305_v12  ;;  %v482_v17 = vpop.permute.xlu0 %481 }
 0x14a   :  { %2055 = vmatpush3.xpose.msk.msra.mxu0 %vm132_vm2, %v484_v14  ;;  %2056 = vmatprep.mubr.msk.f32.mxu0 %vm2238_vm1, %v2237_v6 }
 0x14b   :  { %2064 = vmatprep.subr.mxu0 %v2237_v6 }
 0x14d   :  { %2057 = vmatmul.mubr.msk.f32.vlgmr.msra.gmra.mxu0 %vm132_vm2, %v482_v17  ;;  %v659_v18 = vpop.permute.xlu0 %658  ;;  %v837_v19 = vpop.permute.xlu1 %836 }
 0x14e   :  { %2065 = vmatpush3.xpose.msk.msra.mxu0 %vm132_vm2, %v661_v16  ;;  %2066 = vmatprep.mubr.msk.f32.mxu0 %vm2238_vm1, %v2237_v6 }
 0x14f   :  { %2074 = vmatprep.subr.mxu0 %v2237_v6 }
 0x151   :  { %2067 = vmatmul.mubr.msk.f32.vlgmr.msra.gmra.mxu0 %vm132_vm2, %v659_v18  ;;  %v1011_v20 = vpop.permute.xlu0 %1010  ;;  %v1009_v21 = vpop.permute.xlu1 %1008 }
 0x152   :  { %2075 = vmatpush3.xpose.msk.msra.mxu0 %vm132_vm2, %v837_v19  ;;  %2076 = vmatprep.mubr.msk.f32.mxu0 %vm2238_vm1, %v2237_v6 }
 0x153   :  { %2084 = vmatprep.subr.mxu0 %v2237_v6 }
 0x155   :  { %2077 = vmatmul.mubr.msk.f32.vlgmr.msra.gmra.mxu0 %vm132_vm2, %v2370_v11  ;;  %v1187_v22 = vpop.permute.xlu0 %1186  ;;  %v1185_v24 = vpop.permute.xlu1 %1184 }
 0x156   :  { %2085 = vmatpush3.xpose.msk.msra.mxu0 %vm132_vm2, %v1011_v20  ;;  %2086 = vmatprep.mubr.msk.f32.mxu0 %vm2238_vm1, %v2237_v6 }
 0x157   :  { %2094 = vmatprep.subr.mxu0 %v2237_v6 }
 0x159   :  { %2087 = vmatmul.mubr.msk.f32.vlgmr.msra.gmra.mxu0 %vm132_vm2, %v1009_v21  ;;  %v1363_v23 = vpop.permute.xlu0 %1362  ;;  %v1361_v26 = vpop.permute.xlu1 %1360 }
 0x15a   :  { %2095 = vmatpush3.xpose.msk.msra.mxu0 %vm132_vm2, %v1187_v22  ;;  %2096 = vmatprep.mubr.msk.f32.mxu0 %vm2238_vm1, %v2237_v6 }
 0x15b   :  { %2104 = vmatprep.subr.mxu0 %v2237_v6 }
 0x15d   :  { %2097 = vmatmul.mubr.msk.f32.vlgmr.msra.gmra.mxu0 %vm132_vm2, %v1185_v24  ;;  %v228_v25 = vpop.permute.xlu0 %227  ;;  %v2455_v22 = vpop.permute.xlu1 %401 }
 0x15e   :  { %2040 = vmatpush3.msra.mxu1 %v228_v25  ;;  %2105 = vmatpush3.xpose.msk.msra.mxu0 %vm132_vm2, %v1363_v23 }
 0x15f   :  { %2106 = vmatprep.mubr.msk.f32.mxu0 %vm2238_vm1, %v2237_v6  ;;  %2049 = vmatprep.subr.mxu1 %v2237_v6 }
 0x161   :  { %2107 = vmatmul.mubr.msk.f32.vlgmr.msra.gmra.mxu0 %vm132_vm2, %v1361_v26 }
 0x205   :  { %v203_v34 = vpop.f32.mrf.mxu1 }
 0x206   :  { %v207_v35 = vmul.f32 0.17677669, %v203_v34 }
 0x207   :  { %v2038_v36 = vpop.f32.mrf.mxu1 }
 0x208   :  { %v214_v37 = vsel %vm213_vm4, -1e-10, %v207_v35 }
 0x209   :  { %v378_v38 = vpop.f32.mrf.mxu0  ;;  %v215_v39 = vsel %vm132_vm2, %v214_v37, -inf }
 0x20a   :  { %v382_v40 = vmul.f32 0.17677669, %v378_v38  ;;  %216 = vmax.xlane.f32.xlu0 %v215_v39 }
 0x20b   :  { %v2048_v41 = vpop.f32.mrf.mxu0 }
 0x20c   :  { %v383_v42 = vsel %vm213_vm4, -1e-10, %v382_v40 }
 0x20d   :  { %v555_v43 = vpop.f32.mrf.mxu0  ;;  %v384_v44 = vsel %vm132_vm2, %v383_v42, -inf }
 0x20e   :  { %v559_v46 = vmul.f32 0.17677669, %v555_v43  ;;  %385 = vmax.xlane.f32.xlu1 %v384_v44 }
 0x20f   :  { %v2058_v47 = vpop.f32.mrf.mxu0 }
 0x210   :  { %v560_v48 = vsel %vm213_vm4, -1e-10, %v559_v46 }
 0x211   :  { %v732_v49 = vpop.f32.mrf.mxu0  ;;  %v561_v50 = vsel %vm132_vm2, %v560_v48, -inf }
 0x212   :  { %v736_v52 = vmul.f32 0.17677669, %v732_v49  ;;  %562 = vmax.xlane.f32.xlu0 %v561_v50 }
 0x213   :  { %v2068_v53 = vpop.f32.mrf.mxu0 }
 0x214   :  { %v737_v54 = vsel %vm213_vm4, -1e-10, %v736_v52 }
 0x215   :  { %v908_v55 = vpop.f32.mrf.mxu0  ;;  %v738_v56 = vsel %vm132_vm2, %v737_v54, -inf }
 0x216   :  { %v912_v57 = vmul.f32 0.17677669, %v908_v55  ;;  %739 = vmax.xlane.f32.xlu0 %v738_v56 }
 0x217   :  { %v2078_v58 = vpop.f32.mrf.mxu0 }
 0x218   :  { %v918_v59 = vsel %vm917_vm5, -1e-10, %v912_v57 }
 0x219   :  { %v1082_v60 = vpop.f32.mrf.mxu0  ;;  %v919_v61 = vsel %vm132_vm2, %v918_v59, -inf }
 0x21a   :  { %v1086_v62 = vmul.f32 0.17677669, %v1082_v60  ;;  %920 = vmax.xlane.f32.xlu1 %v919_v61 }
 0x21b   :  { %v2088_v63 = vpop.f32.mrf.mxu0 }
 0x21c   :  { %v1087_v7 = vsel %vm917_vm5, -1e-10, %v1086_v62 }
 0x21d   :  { %v1258_v9 = vpop.f32.mrf.mxu0  ;;  %v1088_v12 = vsel %vm132_vm2, %v1087_v7, -inf }
 0x21e   :  { %v1262_v13 = vmul.f32 0.17677669, %v1258_v9  ;;  %1089 = vmax.xlane.f32.xlu0 %v1088_v12 }
 0x21f   :  { %v2098_v14 = vpop.f32.mrf.mxu0 }
 0x220   :  { %v1263_v15 = vsel %vm917_vm5, -1e-10, %v1262_v13 }
 0x221   :  { %v1434_v16 = vpop.f32.mrf.mxu0  ;;  %v1264_v17 = vsel %vm132_vm2, %v1263_v15, -inf }
 0x222   :  { %v1438_v18 = vmul.f32 0.17677669, %v1434_v16  ;;  %1265 = vmax.xlane.f32.xlu1 %v1264_v17 }
 0x223   :  { %v2108_v19 = vpop.f32.mrf.mxu0 }
 0x224   :  { %v1439_v20 = vsel %vm917_vm5, -1e-10, %v1438_v18 }
 0x225   :  { %v1440_v21 = vsel %vm132_vm2, %v1439_v20, -inf }
 0x226   :  { %1441 = vmax.xlane.f32.xlu0 %v1440_v21 }
 0x233   :  { %755 = vrot.lane.b32.xlu1 %v2361_v10, %s2249_s1 }
 0x23c   :  { %578 = vrot.lane.b32.xlu0 %v2361_v10, %s2250_s10 }
 0x293   :  { %v217_v23 = vpop.xlane.xlu0 %216 }
 0x294   :  { %v218_v24 = vsub.f32 %v214_v37, %v217_v23 }
 0x296   :  { %v219_v25 = vmul.f32 1.442695, %v218_v24 }
 0x297   :  { %v386_v26 = vpop.xlane.xlu1 %385 }
 0x298   :  { %2175 = vpow2.f32 %v219_v25  ;;  %v387_v27 = vsub.f32 %v383_v42, %v386_v26 }
 0x29a   :  { %v388_v28 = vmul.f32 1.442695, %v387_v27 }
 0x29b   :  { %v563_v31 = vpop.xlane.xlu0 %562 }
 0x29c   :  { %2177 = vpow2.f32 %v388_v28  ;;  %v564_v32 = vsub.f32 %v560_v48, %v563_v31 }
 0x29e   :  { %v565_v33 = vmul.f32 1.442695, %v564_v32 }
 0x29f   :  { %v740_v34 = vpop.xlane.xlu0 %739 }
 0x2a0   :  { %2179 = vpow2.f32 %v565_v33  ;;  %v741_v35 = vsub.f32 %v737_v54, %v740_v34 }
 0x2a2   :  { %v742_v36 = vmul.f32 1.442695, %v741_v35 }
 0x2a3   :  { %v921_v44 = vpop.xlane.xlu1 %920 }
 0x2a4   :  { %2181 = vpow2.f32 %v742_v36  ;;  %v922_v46 = vsub.f32 %v918_v59, %v921_v44 }
 0x2a5   :  { %v2176_v38 = vpop.eup %2175 }
 0x2a6   :  { %v221_v10 = vsel %vm132_vm2, %v2176_v38, 0.0  ;;  %v923_v50 = vmul.f32 1.442695, %v922_v46 }
 0x2a7   :  { %222 = vadd.xlane.f32.xlu1 %v221_v10  ;;  %v1090_v47 = vpop.xlane.xlu0 %1089 }
 0x2a8   :  { %v1091_v49 = vsub.f32 %v1087_v7, %v1090_v47  ;;  %2183 = vpow2.f32 %v923_v50 }
 0x2a9   :  { %v2178_v39 = vpop.eup %2177 }
 0x2aa   :  { %v390_v37 = vsel %vm132_vm2, %v2178_v39, 0.0  ;;  %v1092_v53 = vmul.f32 1.442695, %v1091_v49 }
 0x2ab   :  { %391 = vadd.xlane.f32.xlu0 %v390_v37  ;;  %v1266_v48 = vpop.xlane.xlu1 %1265 }
 0x2ac   :  { %v1267_v51 = vsub.f32 %v1263_v15, %v1266_v48  ;;  %2185 = vpow2.f32 %v1092_v53 }
 0x2ad   :  { %v2180_v40 = vpop.eup %2179 }
 0x2ae   :  { %v567_v41 = vsel %vm132_vm2, %v2180_v40, 0.0  ;;  %v1268_v54 = vmul.f32 1.442695, %v1267_v51 }
 0x2af   :  { %568 = vadd.xlane.f32.xlu1 %v567_v41  ;;  %v1442_v52 = vpop.xlane.xlu0 %1441  ;;  %v756_v9 = vpop.permute.xlu1 %755 }
 0x2b0   :  { %v1443_v55 = vsub.f32 %v1439_v20, %v1442_v52  ;;  %2187 = vpow2.f32 %v1268_v54 }
 0x2b1   :  { %v2460_v42 = vpop.eup %2181 }
 0x2b2   :  { %v744_v43 = vsel %vm132_vm2, %v2460_v42, 0.0  ;;  %v1444_v56 = vmul.f32 1.442695, %v1443_v55 }
 0x2b3   :  { %745 = vadd.xlane.f32.xlu0 %v744_v43  ;;  %v579_v12 = vpop.permute.xlu0 %578 }
 0x2b4   :  { %2189 = vpow2.f32 %v1444_v56 }
 0x2b5   :  { %v2184_v57 = vpop.eup %2183 }
 0x2b6   :  { %v925_v60 = vsel %vm132_vm2, %v2184_v57, 0.0 }
 0x2b9   :  { %v2468_v58 = vpop.eup %2185 }
 0x2ba   :  { %v1094_v62 = vsel %vm132_vm2, %v2468_v58, 0.0 }
 0x2bd   :  { %v2471_v59 = vpop.eup %2187 }
 0x2be   :  { %v1270_v61 = vsel %vm132_vm2, %v2471_v59, 0.0 }
 0x2c0   :  { %1104 = vrot.lane.b32.xlu1 %v2370_v11, %s2246_s27 }
 0x2c1   :  { %v2477_v63 = vpop.eup %2189 }
 0x2c2   :  { %v1446_v7 = vsel %vm132_vm2, %v2477_v63, 0.0 }
 0x2c9   :  { %931 = vrot.lane.b32.xlu0 %v2370_v11, %s2247_s28 }
 0x2e4   :  { %926 = vadd.xlane.f32.xlu1 %v925_v60 }
 0x2e8   :  { %1271 = vadd.xlane.f32.xlu1 %v1270_v61  ;;  %1095 = vadd.xlane.f32.xlu0 %v1094_v62 }
 0x2ec   :  { %1447 = vadd.xlane.f32.xlu1 %v1446_v7 }
 0x2fd   :  { %1456 = vrot.lane.b32.xlu1 %v2370_v11, %s2249_s1 }
 0x2fe   :  { %1280 = vrot.lane.b32.xlu0 %v2370_v11, %s2250_s10 }
 0x330   :  { %v223_v13 = vpop.xlane.xlu1 %222 }
 0x331   :  { %2191 = vrcp.f32 %v223_v13 }
 0x334   :  { %v392_v14 = vpop.xlane.xlu0 %391 }
 0x335   :  { %2193 = vrcp.f32 %v392_v14 }
 0x338   :  { %v569_v15 = vpop.xlane.xlu1 %568 }
 0x339   :  { %2195 = vrcp.f32 %v569_v15 }
 0x33c   :  { %v746_v16 = vpop.xlane.xlu0 %745  ;;  %v1105_v25 = vpop.permute.xlu1 %1104 }
 0x33d   :  { %2197 = vrcp.f32 %v746_v16 }
 0x33e   :  { %v2192_v17 = vpop.eup %2191 }
 0x33f   :  { %v225_v18 = vmul.f32 %v2192_v17, %v2176_v38 }
 0x340   :  { %v932_v24 = vpop.permute.xlu0 %931 }
 0x341   :  { %2042 = vmatmul.mubr.msk.f32.vlgmr.msra.gmra.mxu1 %vm132_vm2, %v225_v18  ;;  %226 = vst.msk [vmem:[%s2688_s9] sm:$0xff] %vm132_vm2, %v225_v18 }
 0x342   :  { %v2194_v11 = vpop.eup %2193  ;;  %2050 = vmatpush3.msra.mxu1 %v2455_v22  ;;  %2051 = vmatprep.mubr.msk.f32.mxu1 %vm2238_vm1, %v2237_v6 }
 0x343   :  { %2059 = vmatprep.subr.mxu1 %v2237_v6  ;;  %v2494_v19 = vmul.f32 %v2194_v11, %v2178_v39 }
 0x345   :  { %2052 = vmatmul.mubr.msk.f32.vlgmr.msra.gmra.mxu1 %vm132_vm2, %v2494_v19 }
 0x346   :  { %v2196_v20 = vpop.eup %2195  ;;  %2060 = vmatpush3.msra.mxu1 %v579_v12  ;;  %2061 = vmatprep.mubr.msk.f32.mxu1 %vm2238_vm1, %v2237_v6 }
 0x347   :  { %2069 = vmatprep.subr.mxu1 %v2237_v6  ;;  %v2501_v21 = vmul.f32 %v2196_v20, %v2180_v40 }
 0x349   :  { %2062 = vmatmul.mubr.msk.f32.vlgmr.msra.gmra.mxu1 %vm132_vm2, %v2501_v21 }
 0x34a   :  { %v2198_v22 = vpop.eup %2197  ;;  %2070 = vmatpush3.msra.mxu1 %v756_v9  ;;  %2071 = vmatprep.mubr.msk.f32.mxu1 %vm2238_vm1, %v2237_v6 }
 0x34b   :  { %2079 = vmatprep.subr.mxu1 %v2237_v6  ;;  %v2509_v23 = vmul.f32 %v2198_v22, %v2460_v42 }
 0x34d   :  { %2072 = vmatmul.mubr.msk.f32.vlgmr.msra.gmra.mxu1 %vm132_vm2, %v2509_v23 }
 0x34e   :  { %2080 = vmatpush3.msra.mxu1 %v932_v24  ;;  %2081 = vmatprep.mubr.msk.f32.mxu1 %vm2238_vm1, %v2237_v6 }
 0x34f   :  { %2089 = vmatprep.subr.mxu1 %v2237_v6 }
 0x36d   :  { %v927_v26 = vpop.xlane.xlu1 %926 }
 0x36e   :  { %2199 = vrcp.f32 %v927_v26 }
 0x371   :  { %v1272_v27 = vpop.xlane.xlu1 %1271  ;;  %v1096_v28 = vpop.xlane.xlu0 %1095 }
 0x372   :  { %2201 = vrcp.f32 %v1096_v28 }
 0x373   :  { %2203 = vrcp.f32 %v1272_v27 }
 0x375   :  { %v1448_v31 = vpop.xlane.xlu1 %1447  ;;  %v1281_v38 = vpop.permute.xlu0 %1280 }
 0x376   :  { %2205 = vrcp.f32 %v1448_v31 }
 0x379   :  { %v1457_v37 = vpop.permute.xlu1 %1456 }
 0x37b   :  { %v2200_v32 = vpop.eup %2199 }
 0x37c   :  { %v929_v33 = vmul.f32 %v2200_v32, %v2184_v57  ;;  %v1684_v32 = vld [vmem:[%s2683_s4 + $0x18] sm:$0xff] }
 0x37e   :  { %2082 = vmatmul.mubr.msk.f32.vlgmr.msra.gmra.mxu1 %vm132_vm2, %v929_v33  ;;  %930 = vst.msk [vmem:[%s2688_s9 + $0x8] sm:$0xff] %vm132_vm2, %v929_v33  ;;  %v1683_v33 = vld [vmem:[%s2683_s4 + $0x10] sm:$0xff] }
 0x37f   :  { %2090 = vmatpush3.msra.mxu1 %v1105_v25  ;;  %2091 = vmatprep.mubr.msk.f32.mxu1 %vm2238_vm1, %v2237_v6  ;;  %v2202_v34 = vpop.eup %2201 }
 0x380   :  { %2099 = vmatprep.subr.mxu1 %v2237_v6  ;;  %v2525_v35 = vmul.f32 %v2202_v34, %v2468_v58  ;;  %v2204_v36 = vpop.eup %2203  ;;  %v1682_v34 = vld [vmem:[%s2683_s4 + $0x8] sm:$0xff] }
 0x381   :  { %v2533_v10 = vmul.f32 %v2204_v36, %v2471_v59  ;;  %v1681_v36 = vld [vmem:[%s2683_s4] sm:$0xff] }
 0x382   :  { %2092 = vmatmul.mubr.msk.f32.vlgmr.msra.gmra.mxu1 %vm132_vm2, %v2525_v35 }
 0x383   :  { %2100 = vmatpush3.msra.mxu1 %v1281_v38  ;;  %2101 = vmatprep.mubr.msk.f32.mxu1 %vm2238_vm1, %v2237_v6  ;;  %v2206_v39 = vpop.eup %2205  ;;  %v1780_v38 = vld [vmem:[%s2684_s5 + $0x30] sm:$0xff] }
 0x384   :  { %2109 = vmatprep.subr.mxu1 %v2237_v6  ;;  %v2540_v40 = vmul.f32 %v2206_v39, %v2477_v63 }
 0x386   :  { %2102 = vmatmul.mubr.msk.f32.vlgmr.msra.gmra.mxu1 %vm132_vm2, %v2533_v10 }
 0x387   :  { %2110 = vmatpush3.msra.mxu1 %v1457_v37  ;;  %2111 = vmatprep.mubr.msk.f32.mxu1 %vm2238_vm1, %v2237_v6 }
 0x388   :  { %2125 = vmatprep.subr.mxu1 %v1684_v32 }
 0x38a   :  { %2112 = vmatmul.mubr.msk.f32.vlgmr.msra.gmra.mxu1 %vm132_vm2, %v2540_v40 }
 0x38b   :  { %2126 = vmatpush3.msra.mxu1 %v1684_v32 }
 0x38c   :  { %2127 = vmatprep.subr.mxu1 %v1683_v33 }
 0x38d   :  { %2128 = vmatpush3.msra.mxu1 %v1683_v33 }
 0x38e   :  { %2129 = vmatprep.subr.mxu1 %v1682_v34 }
 0x38f   :  { %2130 = vmatpush3.msra.mxu1 %v1682_v34 }
 0x390   :  { %2131 = vmatprep.subr.mxu1 %v1681_v36 }
 0x391   :  { %2132 = vmatpush3.msra.mxu1 %v1681_v36  ;;  %v1897_v36 = vsub.s32 2, %v2427_v29 }
 0x401   :  { %v299_v41 = vpop.f32.mrf.mxu1 }
 0x402   :  { %303 = vst.msk [vmem:[#allocation2] sm:$0xff] %vm132_vm2, %v299_v41 }
 0x403   :  { %v2043_v42 = vpop.f32.mrf.mxu1 }
 0x405   :  { %v472_v43 = vpop.f32.mrf.mxu1 }
 0x406   :  { %477 = vrot.lane.b32.xlu0 %v472_v43, %s2251_s15 }
 0x407   :  { %v2053_v44 = vpop.f32.mrf.mxu1 }
 0x409   :  { %v649_v46 = vpop.f32.mrf.mxu1 }
 0x40a   :  { %654 = vrot.lane.b32.xlu1 %v649_v46, %s2252_s16  ;;  %v2611_v46 = vld [vmem:[%s2686_s7] sm:$0xf] }
 0x40b   :  { %v2063_v6 = vpop.f32.mrf.mxu1 }
 0x40d   :  { %v826_v47 = vpop.f32.mrf.mxu1 }
 0x40e   :  { %831 = vrot.lane.b32.xlu1 %v826_v47, %s2253_s17  ;;  %v1671_v47 = vrot.slane %v2611_v46, %v211_v30  ;;  %v1776_v30 = vld [vmem:[%s2684_s5 + $0x10] sm:$0xff] }
 0x40f   :  { %v2073_v48 = vpop.f32.mrf.mxu1 }
 0x43e   :  { %v1003_v49 = vpop.f32.mrf.mxu1 }
 0x43f   :  { %1007 = vst.msk [vmem:[#allocation2 + $0x8] sm:$0xff] %vm132_vm2, %v1003_v49 }
 0x440   :  { %v2083_v50 = vpop.f32.mrf.mxu1 }
 0x442   :  { %v1175_v51 = vpop.f32.mrf.mxu1 }
 0x443   :  { %1180 = vrot.lane.b32.xlu0 %v1175_v51, %s2251_s15 }
 0x444   :  { %v2093_v52 = vpop.f32.mrf.mxu1 }
 0x445   :  { %v1677_v52 = vrot.slane %v2611_v46, %v915_v45  ;;  %v1775_v45 = vld [vmem:[%s2684_s5 + $0x8] sm:$0xff] }
 0x446   :  { %v1351_v53 = vpop.f32.mrf.mxu1 }
 0x447   :  { %1356 = vrot.lane.b32.xlu0 %v1351_v53, %s2252_s16 }
 0x448   :  { %v2103_v54 = vpop.f32.mrf.mxu1 }
 0x44a   :  { %v1527_v55 = vpop.f32.mrf.mxu1 }
 0x44b   :  { %1532 = vrot.lane.b32.xlu1 %v1527_v55, %s2253_s17  ;;  %1548 = vrot.lane.b32.xlu0 %v2310_v0, %s2254_s18 }
 0x44c   :  { %v2113_v56 = vpop.f32.mrf.mxu1 }
 0x44d   :  { %v1777_v56 = vld [vmem:[%s2684_s5 + $0x18] sm:$0xff] }
 0x44f   :  { %1546 = vrot.lane.b32.xlu1 %v2315_v1, %s2254_s18  ;;  %1544 = vrot.lane.b32.xlu0 %v2327_v3, %s2254_s18 }
 0x453   :  { %1542 = vrot.lane.b32.xlu1 %v2336_v4, %s2254_s18  ;;  %1554 = vrot.lane.b32.xlu0 %v2358_v8, %s2254_s18 }
 0x478   :  { %v478_v57 = vpop.permute.xlu0 %477 }
 0x479   :  { %480 = vst.msk [vmem:[#allocation2] sm:$0xff] %vm399_vm6, %v478_v57  ;;  %v1774_v57 = vld [vmem:[%s2684_s5] sm:$0xff] }
 0x47c   :  { %v655_v58 = vpop.permute.xlu1 %654 }
 0x47d   :  { %657 = vst.msk [vmem:[#allocation2] sm:$0xff] %vm576_vm7, %v655_v58 }
 0x480   :  { %v832_v60 = vpop.permute.xlu1 %831 }
 0x481   :  { %834 = vst.msk [vmem:[#allocation2] sm:$0xff] %vm753_vm8, %v832_v60 }
 0x488   :  { %v1536_v0 = vld [vmem:[#allocation2] sm:$0xff] }
 0x489   :  { %2122 = vmatprep.mubr.msk.f32.mxu0 %vm46_vm0, %v1536_v0 }
 0x4b5   :  { %v1181_v1 = vpop.permute.xlu0 %1180 }
 0x4b6   :  { %1183 = vst.msk [vmem:[#allocation2 + $0x8] sm:$0xff] %vm399_vm6, %v1181_v1 }
 0x4b9   :  { %v1357_v3 = vpop.permute.xlu0 %1356 }
 0x4ba   :  { %1359 = vst.msk [vmem:[#allocation2 + $0x8] sm:$0xff] %vm576_vm7, %v1357_v3 }
 0x4bd   :  { %v1533_v4 = vpop.permute.xlu1 %1532  ;;  %v1549_v8 = vpop.permute.xlu0 %1548 }
 0x4be   :  { %1535 = vst.msk [vmem:[#allocation2 + $0x8] sm:$0xff] %vm753_vm8, %v1533_v4  ;;  %2114 = vmatprep.subr.mxu0 %v1549_v8 }
 0x4bf   :  { %2115 = vmatpush3.msra.mxu0 %v1549_v8 }
 0x4c1   :  { %v1547_v59 = vpop.permute.xlu1 %1546  ;;  %v1545_v61 = vpop.permute.xlu0 %1544 }
 0x4c2   :  { %2116 = vmatprep.subr.mxu0 %v1547_v59 }
 0x4c3   :  { %2117 = vmatpush3.msra.mxu0 %v1547_v59 }
 0x4c4   :  { %2118 = vmatprep.subr.mxu0 %v1545_v61 }
 0x4c5   :  { %v1543_v62 = vpop.permute.xlu1 %1542  ;;  %2119 = vmatpush3.msra.mxu0 %v1545_v61  ;;  %v1537_v63 = vld [vmem:[#allocation2 + $0x8] sm:$0xff]  ;;  %v1555_v7 = vpop.permute.xlu0 %1554 }
 0x4c6   :  { %2120 = vmatprep.subr.mxu0 %v1543_v62 }
 0x4c7   :  { %2121 = vmatpush3.msra.mxu0 %v1543_v62 }
 0x4c8   :  { %2123 = vmatmul.mubr.msk.f32.vlgmr.msra.gmra.mxu0 %vm46_vm0, %v1537_v63 }
 0x588   :  { %v2124_v9 = vpop.f32.mrf.mxu0 }
 0x589   :  { %v1635_v12 = vadd.f32 %v2124_v9, %v1555_v7 }
 0x58a   :  { %v1629_v13 = vpop.f32.mrf.mxu0 }
 0x58b   :  { %v1630_v14 = vadd.f32 %v1629_v13, %v1555_v7  ;;  %v1640_v15 = vadd.f32 %v1635_v12, %v2343_v5 }
 0x58d   :  { %v1644_v16 = vsel %vm46_vm0, %v1640_v15, 0.0  ;;  %v1639_v17 = vadd.f32 %v1630_v14, %v2321_v2  ;;  %v2574_v2 = vld [vmem:[%s2685_s6] ss:$0 sm:$0xff] }
 0x58e   :  { %1645 = vadd.xlane.f32.xlu0 %v1644_v16 }
 0x58f   :  { %v1641_v18 = vsel %vm46_vm0, %v1639_v17, 0.0 }
 0x590   :  { %1642 = vadd.xlane.f32.xlu1 %v1641_v18 }
 0x617   :  { %v1646_v11 = vpop.xlane.xlu0 %1645 }
 0x618   :  { %v1649_v20 = vmul.f32 0.03125, %v1646_v11 }
 0x619   :  { %v1643_v22 = vpop.xlane.xlu1 %1642 }
 0x61a   :  { %v1651_v24 = vsub.f32 %v1640_v15, %v1649_v20  ;;  %v1648_v25 = vmul.f32 0.03125, %v1643_v22 }
 0x61c   :  { %v1650_v26 = vsub.f32 %v1639_v17, %v1648_v25  ;;  %v1653_v27 = vmul.f32 %v1651_v24, %v1651_v24 }
 0x61e   :  { %v1657_v28 = vsel %vm46_vm0, %v1653_v27, 0.0  ;;  %v1652_v31 = vmul.f32 %v1650_v26, %v1650_v26 }
 0x61f   :  { %1658 = vadd.xlane.f32.xlu1 %v1657_v28 }
 0x620   :  { %v1654_v5 = vsel %vm46_vm0, %v1652_v31, 0.0 }
 0x621   :  { %1655 = vadd.xlane.f32.xlu0 %v1654_v5 }
 0x637   :  { %1782 = vrot.lane.b32.xlu0 %v2574_v2, %s2247_s28 }
 0x63b   :  { %573 = vrot.lane.b32.xlu0 %v2501_v21, %s2252_s16  ;;  %v1781_v21 = vld [vmem:[%s2684_s5 + $0x38] sm:$0xff] }
 0x63c   :  { %2136 = vmatprep.subr.mxu0 %v1781_v21 }
 0x63d   :  { %2137 = vmatpush3.msra.mxu0 %v1781_v21  ;;  %v1903_v21 = vsub.s32 3, %v2427_v29 }
 0x63e   :  { %2138 = vmatprep.subr.mxu0 %v1780_v38 }
 0x63f   :  { %750 = vrot.lane.b32.xlu0 %v2509_v23, %s2253_s17  ;;  %v1779_v23 = vld [vmem:[%s2684_s5 + $0x28] sm:$0xff]  ;;  %2139 = vmatpush3.msra.mxu0 %v1780_v38  ;;  %v1898_v38 = vrot.slane %v2611_v46, %v1897_v36 }
 0x640   :  { %2140 = vmatprep.subr.mxu0 %v1779_v23 }
 0x641   :  { %2141 = vmatpush3.msra.mxu0 %v1779_v23 }
 0x643   :  { %1276 = vrot.lane.b32.xlu0 %v2533_v10, %s2252_s16  ;;  %v1778_v10 = vld [vmem:[%s2684_s5 + $0x20] sm:$0xff] }
 0x644   :  { %2142 = vmatprep.subr.mxu0 %v1778_v10 }
 0x645   :  { %2143 = vmatpush3.msra.mxu0 %v1778_v10 }
 0x646   :  { %2144 = vmatprep.subr.mxu0 %v1777_v56 }
 0x647   :  { %2145 = vmatpush3.msra.mxu0 %v1777_v56 }
 0x648   :  { %2146 = vmatprep.subr.mxu0 %v1776_v30 }
 0x649   :  { %2147 = vmatpush3.msra.mxu0 %v1776_v30 }
 0x64a   :  { %2148 = vmatprep.subr.mxu0 %v1775_v45 }
 0x64b   :  { %2149 = vmatpush3.msra.mxu0 %v1775_v45 }
 0x64c   :  { %2150 = vmatprep.subr.mxu0 %v1774_v57 }
 0x64d   :  { %2151 = vmatpush3.msra.mxu0 %v1774_v57 }
 0x6a8   :  { %v1659_v39 = vpop.xlane.xlu1 %1658 }
 0x6a9   :  { %v1661_v37 = vmul.f32 0.03125, %v1659_v39  ;;  %v1904_v39 = vrot.slane %v2611_v46, %v1903_v21 }
 0x6aa   :  { %v1656_v41 = vpop.xlane.xlu0 %1655 }
 0x6ab   :  { %v1663_v42 = vadd.f32 1e-05, %v1661_v37  ;;  %v1660_v43 = vmul.f32 0.03125, %v1656_v41 }
 0x6ad   :  { %2207 = vrsqrt.f32 %v1663_v42  ;;  %v1662_v44 = vadd.f32 1e-05, %v1660_v43 }
 0x6ae   :  { %v1783_v59 = vpop.permute.xlu0 %1782 }
 0x6af   :  { %2209 = vrsqrt.f32 %v1662_v44 }
 0x6b2   :  { %v574_v15 = vpop.permute.xlu0 %573 }
 0x6b6   :  { %v751_v22 = vpop.permute.xlu0 %750 }
 0x6ba   :  { %v2208_v6 = vpop.eup %2207  ;;  %v1277_v27 = vpop.permute.xlu0 %1276 }
 0x6bb   :  { %v1667_v48 = vmul.f32 %v2208_v6, %v1651_v24 }
 0x6bc   :  { %v2210_v49 = vpop.eup %2209 }
 0x6bd   :  { %v1666_v50 = vmul.f32 %v2210_v49, %v1650_v26  ;;  %v1673_v51 = vmul.f32 %v1671_v47, %v1667_v48 }
 0x6bf   :  { %v1672_v53 = vmul.f32 %v1671_v47, %v1666_v50  ;;  %v1679_v55 = vadd.f32 %v1677_v52, %v1673_v51 }
 0x6c1   :  { %v1678_v54 = vadd.f32 %v1677_v52, %v1672_v53 }
 0x6c3   :  { %2133 = vmatprep.mubr.msk.f32.mxu1 %vm46_vm0, %v1678_v54 }
 0x6c4   :  { %2134 = vmatmul.mubr.msk.f32.vlgmr.msra.gmra.mxu1 %vm46_vm0, %v1679_v55 }
 0x784   :  { %v2135_v58 = vpop.f32.mrf.mxu1 }
 0x785   :  { %v1769_v60 = vadd.f32 %v2135_v58, %v2574_v2 }
 0x786   :  { %v1763_v0 = vpop.f32.mrf.mxu1 }
 0x787   :  { %v1764_v1 = vadd.f32 %v2574_v2, %v1763_v0  ;;  %v1773_v4 = vmax.f32 %v1769_v60, 0.0 }
 0x789   :  { %v1772_v3 = vmax.f32 %v1764_v1, 0.0 }
 0x78b   :  { %2152 = vmatprep.mubr.msk.f32.mxu0 %vm1785_vm9, %v1772_v3 }
 0x78c   :  { %2153 = vmatmul.mubr.msk.f32.vlgmr.msra.gmra.mxu0 %vm1785_vm9, %v1773_v4 }
 0x84c   :  { %v2154_v8 = vpop.f32.mrf.mxu0 }
 0x84d   :  { %v1864_v62 = vadd.f32 %v2154_v8, %v1783_v59 }
 0x84e   :  { %v1858_v61 = vpop.f32.mrf.mxu0 }
 0x84f   :  { %v1859_v63 = vadd.f32 %v1858_v61, %v1783_v59  ;;  %v1868_v12 = vadd.f32 %v1864_v62, %v1679_v55 }
 0x851   :  { %v1867_v7 = vadd.f32 %v1859_v63, %v1678_v54  ;;  %v1872_v13 = vsel %vm46_vm0, %v1868_v12, 0.0 }
 0x853   :  { %v1869_v9 = vsel %vm46_vm0, %v1867_v7, 0.0 }
 0x854   :  { %1870 = vadd.xlane.f32.xlu1 %v1869_v9 }
 0x858   :  { %1873 = vadd.xlane.f32.xlu1 %v1872_v13 }
 0x869   :  { %396 = vrot.lane.b32.xlu1 %v2494_v19, %s2251_s15 }
 0x86d   :  { %1100 = vrot.lane.b32.xlu1 %v2525_v35, %s2251_s15 }
 0x871   :  { %1452 = vrot.lane.b32.xlu1 %v2540_v40, %s2253_s17 }
 0x8dd   :  { %v1871_v14 = vpop.xlane.xlu1 %1870 }
 0x8de   :  { %v1875_v16 = vmul.f32 0.03125, %v1871_v14 }
 0x8e0   :  { %v1877_v17 = vsub.f32 %v1867_v7, %v1875_v16 }
 0x8e1   :  { %v1874_v18 = vpop.xlane.xlu1 %1873 }
 0x8e2   :  { %v1876_v11 = vmul.f32 0.03125, %v1874_v18  ;;  %v1879_v20 = vmul.f32 %v1877_v17, %v1877_v17 }
 0x8e4   :  { %v1878_v24 = vsub.f32 %v1868_v12, %v1876_v11  ;;  %v1881_v25 = vsel %vm46_vm0, %v1879_v20, 0.0 }
 0x8e5   :  { %1882 = vadd.xlane.f32.xlu0 %v1881_v25  ;;  %v397_v26 = vpop.permute.xlu1 %396 }
 0x8e6   :  { %400 = vst.msk [vmem:[%s2688_s9] sm:$0xff] %vm399_vm6, %v397_v26  ;;  %v1880_v19 = vmul.f32 %v1878_v24, %v1878_v24 }
 0x8e7   :  { %577 = vst.msk [vmem:[%s2688_s9] sm:$0xff] %vm576_vm7, %v574_v15 }
 0x8e8   :  { %754 = vst.msk [vmem:[%s2688_s9] sm:$0xff] %vm753_vm8, %v751_v22  ;;  %v1884_v35 = vsel %vm46_vm0, %v1880_v19, 0.0 }
 0x8e9   :  { %1885 = vadd.xlane.f32.xlu1 %v1884_v35  ;;  %v1101_v40 = vpop.permute.xlu1 %1100 }
 0x8ea   :  { %1103 = vst.msk [vmem:[%s2688_s9 + $0x8] sm:$0xff] %vm399_vm6, %v1101_v40 }
 0x8eb   :  { %1279 = vst.msk [vmem:[%s2688_s9 + $0x8] sm:$0xff] %vm576_vm7, %v1277_v27 }
 0x8ed   :  { %v1453_v28 = vpop.permute.xlu1 %1452 }
 0x8ee   :  { %1455 = vst.msk [vmem:[%s2688_s9 + $0x8] sm:$0xff] %vm753_vm8, %v1453_v28  ;;  %s2255_s9 = smov [#allocation3]  }
 0x8ef   :  { %s1914_s27 = sshll.u32 %s2255_s9, 4  ;;  %s1915_s27 = int_to_ptr.vmem [resolvable:$true] %s1914_s27 }
 0x8f0   :  { %s2215_s28 = scalar_lea.vmem %s1915_s27, 256  ;;  %p2220_p1 = scmp.lt.s32.totalorder %s1915_s27, %s1915_s27 }
 0x8f1   :  { %p2216_p0 = scmp.ne.s32.totalorder %s1915_s27, %s2215_s28  ;;  %p2221_p2 = scmp.lt.s32.totalorder %s2215_s28, %s2215_s28 }
 0x8f3   :  { %p2222_p3 = por %p2221_p2, %p2220_p1 }
 0x8f5   :  { %p2223_p4 = pnand %p2222_p3, %p2216_p0 }
 0x96e   :  { %v1883_v31 = vpop.xlane.xlu0 %1882 }
 0x96f   :  { %v1887_v5 = vmul.f32 0.03125, %v1883_v31 }
 0x971   :  { %v1889_v2 = vadd.f32 1e-05, %v1887_v5 }
 0x972   :  { %v1886_v32 = vpop.xlane.xlu1 %1885 }
 0x973   :  { %2211 = vrsqrt.f32 %v1889_v2  ;;  %v1888_v33 = vmul.f32 0.03125, %v1886_v32 }
 0x975   :  { %v1890_v34 = vadd.f32 1e-05, %v1888_v33 }
 0x977   :  { %2213 = vrsqrt.f32 %v1890_v34 }
 0x980   :  { %v2212_v23 = vpop.eup %2211 }
 0x981   :  { %v1893_v10 = vmul.f32 %v2212_v23, %v1877_v17 }
 0x983   :  { %v1899_v37 = vmul.f32 %v1898_v38, %v1893_v10 }
 0x984   :  { %v2214_v41 = vpop.eup %2213 }
 0x985   :  { %v1894_v42 = vmul.f32 %v2214_v41, %v1878_v24  ;;  %v1905_v43 = vadd.f32 %v1904_v39, %v1899_v37 }
 0x987   :  { %v1900_v44 = vmul.f32 %v1898_v38, %v1894_v42  ;;  %1907 = vst.msk [vmem:[#allocation3] sm:$0xff] %vm46_vm0, %v1905_v43 }
 0x989   :  { %v1906_v6 = vadd.f32 %v1904_v39, %v1900_v44 }
 0x98b   :  { %1908 = vst.msk [vmem:[#allocation3 + $0x8] sm:$0xff] %vm46_vm0, %v1906_v6 }
 0x98c   :  { %2226 = shalt.err (!%p2223_p4)
}
 0x98d   :  { %s2256_s4 = smov 128  }
 0x98e   :  { %1920 = dma.vmem_to_hbm [thread:$0]  %s1915_s27, 256, %s2687_s8, [#allocation4], %s2256_s4, %s2256_s4, %s2251_s15  }
 0x98f   :  { %2235 = dma.done.wait [#allocation4], 256  }
 0x990   :  { %2236 = vsyncadd [#allocation4], 4294967040 }
 0x991   :  { %1928 = vsyncpa [#allocation4], 1 }

</bundles_post_ra>
